<compile_context>
chip_gen: v7x
topology: tpu7x:2x2x1
jax: 0.10.0
libtpu: 0.0.40
codegen_flags: <defaults>
</compile_context>

<pallas_src>
import jax
import jax.numpy as jnp
from jax.experimental import pallas as pl
from jax.experimental.pallas import tpu as pltpu

EPS = 1e-5


def _vmem():
    return pl.BlockSpec(memory_space=pltpu.MemorySpace.VMEM)


# ---------------------------------------------------------------------------
# Fused kernel: bn1 (eval affine) + wavefront stacked LSTM + bn2 + classifier
# ---------------------------------------------------------------------------

def _make_fused_rnn_kernel(batch, seq_len, input_dim, hidden, n_layers):
    B, S, D, H, L = batch, seq_len, input_dim, hidden, n_layers
    GH = L * H  # width of one gate group across all layers

    def kernel(x_ref, bn1s_ref, bn1b_ref, rhsx_ref, rhsh_ref, bias_ref,
               bn2s_ref, bn2b_ref, wcls_ref, bcls_ref, out_ref):
        # bn1 eval-mode affine, done in-kernel on the (B, S*D) tile.
        xf = x_ref[...] * bn1s_ref[...] + bn1b_ref[...]          # (B, S*D) f32
        xf_b = xf.astype(jnp.bfloat16)                           # matmul operand

        rhs_x = rhsx_ref[...]                                    # (D,   4*GH) bf16
        rhs_h = rhsh_ref[...]                                    # (L*H, 4*GH) bf16
        bias = bias_ref[...]                                     # (1,   4*GH) f32

        # Layer-concatenated hidden / cell state: layer l lives in lanes
        # [l*H, (l+1)*H).  Updated full-width each slot.
        hcat = jnp.zeros((B, GH), jnp.float32)
        ccat = jnp.zeros((B, GH), jnp.float32)
        lane = jax.lax.broadcasted_iota(jnp.int32, (B, GH), 1)   # hoisted

        # Wavefront: at slot s, layer l advances its timestep t = s - l.
        # All per-slot gate matmuls read slot-start state, so layers are
        # independent within a slot and the serial chain is S + L - 1 links.
        for s in range(S + L - 1):
            g = jnp.dot(hcat.astype(jnp.bfloat16), rhs_h,
                        preferred_element_type=jnp.float32) + bias
            if s < S:
                # layer-0 input for this slot: static lane slice of xf.
                x_s = xf_b[:, s * D:(s + 1) * D]                 # (B, D)
                g = g + jnp.dot(x_s, rhs_x,
                                preferred_element_type=jnp.float32)

            # Packed gate column order: [ i | f | o | g ], each block GH wide
            # (layer-major inside the block) -> one sigmoid + one tanh pass.
            sig = jax.nn.sigmoid(g[:, :3 * GH])
            th = jnp.tanh(g[:, 3 * GH:])
            i_a = sig[:, 0 * GH:1 * GH]
            f_a = sig[:, 1 * GH:2 * GH]
            o_a = sig[:, 2 * GH:3 * GH]

            c_new = f_a * ccat + i_a * th
            h_new = o_a * jnp.tanh(c_new)

            if s < L - 1:
                # Leading edge: layers l > s have not started yet; keep their
                # state at zero (static prefix mask). Trailing-edge garbage
                # commits are never read downstream, so no mask is needed.
                act = lane < (s + 1) * H
                ccat = jnp.where(act, c_new, ccat)
                hcat = jnp.where(act, h_new, hcat)
            else:
                ccat = c_new
                hcat = h_new

        # h_n[-1] = final hidden of the top layer.
        h_last = hcat[:, (L - 1) * H:]                            # (B, H)
        # Fused head: bn2 eval affine + Linear classifier.
        hn = h_last * bn2s_ref[...] + bn2b_ref[...]
        out_ref[...] = (jnp.dot(hn.astype(jnp.bfloat16), wcls_ref[...],
                                preferred_element_type=jnp.float32)
                        + bcls_ref[...])

    return kernel


# ---------------------------------------------------------------------------
# Forward pass (mirrors RNN.forward with rnntype='LSTM', firstBN=True)
# ---------------------------------------------------------------------------

def rnn_forward(prepared, x):
    B, S, D = x.shape
    H = prepared['bn2_scale'].shape[1]
    L = prepared['rhs_h'].shape[0] // H
    C = prepared['cls_b'].shape[1]

    # Row-major (B, S, D) -> (B, S*D) is a bitcast view; no HBM round trip.
    x2 = x.reshape(B, S * D)

    kernel = _make_fused_rnn_kernel(B, S, D, H, L)
    args = (x2,
            prepared['bn1_scale'], prepared['bn1_shift'],
            prepared['rhs_x'], prepared['rhs_h'], prepared['bias'],
            prepared['bn2_scale'], prepared['bn2_shift'],
            prepared['cls_wt'], prepared['cls_b'])

    return pl.pallas_call(
        kernel,
        out_shape=jax.ShapeDtypeStruct((B, C), jnp.float32),
        in_specs=[_vmem()] * len(args),
        out_specs=_vmem(),
    )(*args)


# ---------------------------------------------------------------------------
# Parameter init (mirrors the PyTorch module's shapes) + one-time preparation
# (BN folds, gate reordering, packed block-RHS layout, bf16 weight cast).
# ---------------------------------------------------------------------------

def init_params(key, input_dim, hidden_dim, n_layers, n_classes):
    keys = iter(jax.random.split(key, 4 * n_layers + 10))
    k = 1.0 / jnp.sqrt(jnp.float32(hidden_dim))

    def u(rng, shape):
        return jax.random.uniform(rng, shape, jnp.float32, -k, k)

    params = {}
    f1 = input_dim * input_dim
    params['bn1_gamma'] = jax.random.uniform(next(keys), (f1,), jnp.float32, 0.5, 1.5)
    params['bn1_beta'] = 0.1 * jax.random.normal(next(keys), (f1,), jnp.float32)
    params['bn1_mean'] = 0.1 * jax.random.normal(next(keys), (f1,), jnp.float32)
    params['bn1_var'] = jax.random.uniform(next(keys), (f1,), jnp.float32, 0.5, 1.5)

    lstm = []
    for layer in range(n_layers):
        d_in = input_dim if layer == 0 else hidden_dim
        lstm.append({
            'w_ih': u(next(keys), (4 * hidden_dim, d_in)),
            'w_hh': u(next(keys), (4 * hidden_dim, hidden_dim)),
            'b_ih': u(next(keys), (4 * hidden_dim,)),
            'b_hh': u(next(keys), (4 * hidden_dim,)),
        })
    params['lstm'] = lstm

    params['bn2_gamma'] = jax.random.uniform(next(keys), (hidden_dim,), jnp.float32, 0.5, 1.5)
    params['bn2_beta'] = 0.1 * jax.random.normal(next(keys), (hidden_dim,), jnp.float32)
    params['bn2_mean'] = 0.1 * jax.random.normal(next(keys), (hidden_dim,), jnp.float32)
    params['bn2_var'] = jax.random.uniform(next(keys), (hidden_dim,), jnp.float32, 0.5, 1.5)

    params['cls_w'] = u(next(keys), (n_classes, hidden_dim))
    params['cls_b'] = u(next(keys), (n_classes,))
    return params


def prepare_params(raw):
    """One-time folds/transposes/packing so the traced forward does no weight prep."""
    H = raw['lstm'][0]['w_hh'].shape[1]
    D = raw['lstm'][0]['w_ih'].shape[1]
    L = len(raw['lstm'])
    GH = L * H

    prepared = {}
    bn1_scale = raw['bn1_gamma'] / jnp.sqrt(raw['bn1_var'] + EPS)
    prepared['bn1_scale'] = bn1_scale[None, :]
    prepared['bn1_shift'] = (raw['bn1_beta'] - raw['bn1_mean'] * bn1_scale)[None, :]

    # Packed gate columns: [ i | f | o | g ] blocks of width GH, layer-major
    # inside each block.  PyTorch row order of the 4H dim is (i, f, g, o).
    gate_src = {'i': 0, 'f': 1, 'g': 2, 'o': 3}
    gate_dst = {'i': 0, 'f': 1, 'o': 2, 'g': 3}

    rhs_x = jnp.zeros((D, 4 * GH), jnp.float32)      # layer-0 input weights
    rhs_h = jnp.zeros((GH, 4 * GH), jnp.float32)     # recurrent + inter-layer weights
    bias = jnp.zeros((4 * GH,), jnp.float32)

    for l, lw in enumerate(raw['lstm']):
        w_ih, w_hh = lw['w_ih'], lw['w_hh']          # (4H, D_in), (4H, H)
        b = lw['b_ih'] + lw['b_hh']                  # (4H,)
        for gname in ('i', 'f', 'g', 'o'):
            src = gate_src[gname] * H
            dst = gate_dst[gname] * GH + l * H
            # Recurrent weights of layer l (rows = h_l lanes).
            rhs_h = rhs_h.at[l * H:(l + 1) * H, dst:dst + H].set(
                w_hh[src:src + H, :].T)
            if l == 0:
                rhs_x = rhs_x.at[:, dst:dst + H].set(w_ih[src:src + H, :].T)
            else:
                # Inter-layer input weights (rows = h_{l-1} lanes).
                rhs_h = rhs_h.at[(l - 1) * H:l * H, dst:dst + H].set(
                    w_ih[src:src + H, :].T)
            bias = bias.at[dst:dst + H].set(b[src:src + H])

    prepared['rhs_x'] = rhs_x.astype(jnp.bfloat16)
    prepared['rhs_h'] = rhs_h.astype(jnp.bfloat16)
    prepared['bias'] = bias[None, :]

    bn2_scale = raw['bn2_gamma'] / jnp.sqrt(raw['bn2_var'] + EPS)
    prepared['bn2_scale'] = bn2_scale[None, :]
    prepared['bn2_shift'] = (raw['bn2_beta'] - raw['bn2_mean'] * bn2_scale)[None, :]
    prepared['cls_wt'] = raw['cls_w'].T.astype(jnp.bfloat16)   # (H, C)
    prepared['cls_b'] = raw['cls_b'][None, :]
    return prepared


# ---------------------------------------------------------------------------
# Pure-JAX reference (f32, eval-mode BN) for a correctness sanity check.
# ---------------------------------------------------------------------------

def reference_forward(raw, x):
    B, S, D = x.shape
    H = raw['bn2_gamma'].shape[0]
    scale1 = raw['bn1_gamma'] / jnp.sqrt(raw['bn1_var'] + EPS)
    shift1 = raw['bn1_beta'] - raw['bn1_mean'] * scale1
    inp = (x.reshape(B, S * D) * scale1 + shift1).reshape(B, S, D)
    h_last = None
    for lw in raw['lstm']:
        w_ih, w_hh = lw['w_ih'], lw['w_hh']
        b = lw['b_ih'] + lw['b_hh']
        h = jnp.zeros((B, H), jnp.float32)
        c = jnp.zeros((B, H), jnp.float32)
        outs = []
        for t in range(S):
            g = inp[:, t, :] @ w_ih.T + h @ w_hh.T + b
            i = jax.nn.sigmoid(g[:, 0:H])
            f = jax.nn.sigmoid(g[:, H:2 * H])
            gg = jnp.tanh(g[:, 2 * H:3 * H])
            o = jax.nn.sigmoid(g[:, 3 * H:4 * H])
            c = f * c + i * gg
            h = o * jnp.tanh(c)
            outs.append(h)
        inp = jnp.stack(outs, axis=1)
        h_last = h
    scale2 = raw['bn2_gamma'] / jnp.sqrt(raw['bn2_var'] + EPS)
    shift2 = raw['bn2_beta'] - raw['bn2_mean'] * scale2
    hn = h_last * scale2 + shift2
    return hn @ raw['cls_w'].T + raw['cls_b']


if __name__ == "__main__":
    input_dim = 16     # seq == input_dim (required by bn1 on input_dim*input_dim)
    hidden_dim = 32
    n_layers = 2
    n_classes = 8
    batch = 2

    key = jax.random.PRNGKey(0)
    kp, kx = jax.random.split(key)
    raw_params = init_params(kp, input_dim, hidden_dim, n_layers, n_classes)
    prepared = prepare_params(raw_params)   # runs once, outside the jit forward
    x = jax.random.normal(kx, (batch, input_dim, input_dim), dtype=jnp.float32)

    fwd = jax.jit(rnn_forward)
    out = jax.block_until_ready(fwd(prepared, x))
    assert out.shape == (batch, n_classes)
    assert bool(jnp.all(jnp.isfinite(out)))

    # Sanity check vs f32 reference (kernel uses bf16 matmul operands,
    # f32 accumulation -> small, bounded drift).
    ref = reference_forward(raw_params, x)
    max_err = float(jnp.max(jnp.abs(out - ref)))
    assert max_err < 0.08, f"max abs error vs reference: {max_err}"
    print("KERNEL_OK")
</pallas_src>

<mosaic_0001>
module attributes {stable_mosaic.version = 11 : i64} {
  func.func @kernel(%arg0: memref<2x256xf32, #tpu.memory_space<vmem>>, %arg1: memref<1x256xf32, #tpu.memory_space<vmem>>, %arg2: memref<1x256xf32, #tpu.memory_space<vmem>>, %arg3: memref<16x256xbf16, #tpu.memory_space<vmem>>, %arg4: memref<64x256xbf16, #tpu.memory_space<vmem>>, %arg5: memref<1x256xf32, #tpu.memory_space<vmem>>, %arg6: memref<1x32xf32, #tpu.memory_space<vmem>>, %arg7: memref<1x32xf32, #tpu.memory_space<vmem>>, %arg8: memref<32x8xbf16, #tpu.memory_space<vmem>>, %arg9: memref<1x8xf32, #tpu.memory_space<vmem>>, %arg10: memref<2x8xf32, #tpu.memory_space<vmem>>) attributes {dimension_semantics = [], scalar_prefetch = 0 : i64, scratch_operands = 0 : i64, tpu.core_type = #tpu.core_type<tc>} {
    %c0 = arith.constant 0 : index
    %c0_0 = arith.constant 0 : index
    %0 = vector.load %arg0[%c0, %c0_0] : memref<2x256xf32, #tpu.memory_space<vmem>>, vector<2x256xf32>
    %c0_1 = arith.constant 0 : index
    %c0_2 = arith.constant 0 : index
    %1 = vector.load %arg1[%c0_1, %c0_2] : memref<1x256xf32, #tpu.memory_space<vmem>>, vector<1x256xf32>
    %2 = vector.broadcast %1 : vector<1x256xf32> to vector<2x256xf32>
    %3 = arith.mulf %0, %2 : vector<2x256xf32>
    %c0_3 = arith.constant 0 : index
    %c0_4 = arith.constant 0 : index
    %4 = vector.load %arg2[%c0_3, %c0_4] : memref<1x256xf32, #tpu.memory_space<vmem>>, vector<1x256xf32>
    %5 = vector.broadcast %4 : vector<1x256xf32> to vector<2x256xf32>
    %6 = arith.addf %3, %5 : vector<2x256xf32>
    %7 = arith.truncf %6 : vector<2x256xf32> to vector<2x256xbf16>
    %c0_5 = arith.constant 0 : index
    %c0_6 = arith.constant 0 : index
    %8 = vector.load %arg3[%c0_5, %c0_6] : memref<16x256xbf16, #tpu.memory_space<vmem>>, vector<16x256xbf16>
    %c0_7 = arith.constant 0 : index
    %c0_8 = arith.constant 0 : index
    %9 = vector.load %arg4[%c0_7, %c0_8] : memref<64x256xbf16, #tpu.memory_space<vmem>>, vector<64x256xbf16>
    %c0_9 = arith.constant 0 : index
    %c0_10 = arith.constant 0 : index
    %10 = vector.load %arg5[%c0_9, %c0_10] : memref<1x256xf32, #tpu.memory_space<vmem>>, vector<1x256xf32>
    %cst = arith.constant 0.000000e+00 : f32
    %11 = vector.broadcast %cst : f32 to vector<2x64xf32>
    %cst_11 = arith.constant 0.000000e+00 : f32
    %12 = vector.broadcast %cst_11 : f32 to vector<2x64xf32>
    %13 = tpu.iota {dimensions = array<i32: 1>} : vector<2x64xi32>
    %14 = arith.truncf %11 : vector<2x64xf32> to vector<2x64xbf16>
    %cst_12 = arith.constant dense<0.000000e+00> : vector<2x256xf32>
    %15 = tpu.matmul %14, %9, %cst_12 {dimension_numbers = #tpu.dot_dimension_numbers<[1], [0], [0], [1], [0, 0, 1, 1], [], []>} : vector<2x64xbf16>, vector<64x256xbf16>, vector<2x256xf32> -> vector<2x256xf32>
    %16 = vector.broadcast %10 : vector<1x256xf32> to vector<2x256xf32>
    %17 = arith.addf %15, %16 : vector<2x256xf32>
    %18 = vector.extract_strided_slice %7 {offsets = [0, 0], sizes = [2, 16], strides = [1, 1]} : vector<2x256xbf16> to vector<2x16xbf16>
    %cst_13 = arith.constant dense<0.000000e+00> : vector<2x256xf32>
    %19 = tpu.matmul %18, %8, %cst_13 {dimension_numbers = #tpu.dot_dimension_numbers<[1], [0], [0], [1], [0, 0, 1, 1], [], []>} : vector<2x16xbf16>, vector<16x256xbf16>, vector<2x256xf32> -> vector<2x256xf32>
    %20 = arith.addf %17, %19 : vector<2x256xf32>
    %21 = vector.extract_strided_slice %20 {offsets = [0, 0], sizes = [2, 192], strides = [1, 1]} : vector<2x256xf32> to vector<2x192xf32>
    %22 = arith.negf %21 : vector<2x192xf32>
    %23 = math.exp %22 : vector<2x192xf32>
    %cst_14 = arith.constant 1.000000e+00 : f32
    %24 = vector.broadcast %cst_14 : f32 to vector<2x192xf32>
    %25 = arith.addf %24, %23 : vector<2x192xf32>
    %26 = arith.divf %24, %25 : vector<2x192xf32>
    %27 = vector.extract_strided_slice %20 {offsets = [0, 192], sizes = [2, 64], strides = [1, 1]} : vector<2x256xf32> to vector<2x64xf32>
    %28 = math.tanh %27 : vector<2x64xf32>
    %29 = vector.extract_strided_slice %26 {offsets = [0, 0], sizes = [2, 64], strides = [1, 1]} : vector<2x192xf32> to vector<2x64xf32>
    %30 = vector.extract_strided_slice %26 {offsets = [0, 64], sizes = [2, 64], strides = [1, 1]} : vector<2x192xf32> to vector<2x64xf32>
    %31 = vector.extract_strided_slice %26 {offsets = [0, 128], sizes = [2, 64], strides = [1, 1]} : vector<2x192xf32> to vector<2x64xf32>
    %32 = arith.mulf %30, %12 : vector<2x64xf32>
    %33 = arith.mulf %29, %28 : vector<2x64xf32>
    %34 = arith.addf %32, %33 : vector<2x64xf32>
    %35 = math.tanh %34 : vector<2x64xf32>
    %36 = arith.mulf %31, %35 : vector<2x64xf32>
    %c32_i32 = arith.constant 32 : i32
    %37 = vector.broadcast %c32_i32 : i32 to vector<2x64xi32>
    %38 = arith.cmpi slt, %13, %37 : vector<2x64xi32>
    %39 = arith.select %38, %34, %12 : vector<2x64xi1>, vector<2x64xf32>
    %40 = arith.select %38, %36, %11 : vector<2x64xi1>, vector<2x64xf32>
    %41 = arith.truncf %40 : vector<2x64xf32> to vector<2x64xbf16>
    %cst_15 = arith.constant dense<0.000000e+00> : vector<2x256xf32>
    %42 = tpu.matmul %41, %9, %cst_15 {dimension_numbers = #tpu.dot_dimension_numbers<[1], [0], [0], [1], [0, 0, 1, 1], [], []>} : vector<2x64xbf16>, vector<64x256xbf16>, vector<2x256xf32> -> vector<2x256xf32>
    %43 = vector.broadcast %10 : vector<1x256xf32> to vector<2x256xf32>
    %44 = arith.addf %42, %43 : vector<2x256xf32>
    %45 = vector.extract_strided_slice %7 {offsets = [0, 16], sizes = [2, 16], strides = [1, 1]} : vector<2x256xbf16> to vector<2x16xbf16>
    %cst_16 = arith.constant dense<0.000000e+00> : vector<2x256xf32>
    %46 = tpu.matmul %45, %8, %cst_16 {dimension_numbers = #tpu.dot_dimension_numbers<[1], [0], [0], [1], [0, 0, 1, 1], [], []>} : vector<2x16xbf16>, vector<16x256xbf16>, vector<2x256xf32> -> vector<2x256xf32>
    %47 = arith.addf %44, %46 : vector<2x256xf32>
    %48 = vector.extract_strided_slice %47 {offsets = [0, 0], sizes = [2, 192], strides = [1, 1]} : vector<2x256xf32> to vector<2x192xf32>
    %49 = arith.negf %48 : vector<2x192xf32>
    %50 = math.exp %49 : vector<2x192xf32>
    %cst_17 = arith.constant 1.000000e+00 : f32
    %51 = vector.broadcast %cst_17 : f32 to vector<2x192xf32>
    %52 = arith.addf %51, %50 : vector<2x192xf32>
    %53 = arith.divf %51, %52 : vector<2x192xf32>
    %54 = vector.extract_strided_slice %47 {offsets = [0, 192], sizes = [2, 64], strides = [1, 1]} : vector<2x256xf32> to vector<2x64xf32>
    %55 = math.tanh %54 : vector<2x64xf32>
    %56 = vector.extract_strided_slice %53 {offsets = [0, 0], sizes = [2, 64], strides = [1, 1]} : vector<2x192xf32> to vector<2x64xf32>
    %57 = vector.extract_strided_slice %53 {offsets = [0, 64], sizes = [2, 64], strides = [1, 1]} : vector<2x192xf32> to vector<2x64xf32>
    %58 = vector.extract_strided_slice %53 {offsets = [0, 128], sizes = [2, 64], strides = [1, 1]} : vector<2x192xf32> to vector<2x64xf32>
    %59 = arith.mulf %57, %39 : vector<2x64xf32>
    %60 = arith.mulf %56, %55 : vector<2x64xf32>
    %61 = arith.addf %59, %60 : vector<2x64xf32>
    %62 = math.tanh %61 : vector<2x64xf32>
    %63 = arith.mulf %58, %62 : vector<2x64xf32>
    %64 = arith.truncf %63 : vector<2x64xf32> to vector<2x64xbf16>
    %cst_18 = arith.constant dense<0.000000e+00> : vector<2x256xf32>
    %65 = tpu.matmul %64, %9, %cst_18 {dimension_numbers = #tpu.dot_dimension_numbers<[1], [0], [0], [1], [0, 0, 1, 1], [], []>} : vector<2x64xbf16>, vector<64x256xbf16>, vector<2x256xf32> -> vector<2x256xf32>
    %66 = vector.broadcast %10 : vector<1x256xf32> to vector<2x256xf32>
    %67 = arith.addf %65, %66 : vector<2x256xf32>
    %68 = vector.extract_strided_slice %7 {offsets = [0, 32], sizes = [2, 16], strides = [1, 1]} : vector<2x256xbf16> to vector<2x16xbf16>
    %cst_19 = arith.constant dense<0.000000e+00> : vector<2x256xf32>
    %69 = tpu.matmul %68, %8, %cst_19 {dimension_numbers = #tpu.dot_dimension_numbers<[1], [0], [0], [1], [0, 0, 1, 1], [], []>} : vector<2x16xbf16>, vector<16x256xbf16>, vector<2x256xf32> -> vector<2x256xf32>
    %70 = arith.addf %67, %69 : vector<2x256xf32>
    %71 = vector.extract_strided_slice %70 {offsets = [0, 0], sizes = [2, 192], strides = [1, 1]} : vector<2x256xf32> to vector<2x192xf32>
    %72 = arith.negf %71 : vector<2x192xf32>
    %73 = math.exp %72 : vector<2x192xf32>
    %cst_20 = arith.constant 1.000000e+00 : f32
    %74 = vector.broadcast %cst_20 : f32 to vector<2x192xf32>
    %75 = arith.addf %74, %73 : vector<2x192xf32>
    %76 = arith.divf %74, %75 : vector<2x192xf32>
    %77 = vector.extract_strided_slice %70 {offsets = [0, 192], sizes = [2, 64], strides = [1, 1]} : vector<2x256xf32> to vector<2x64xf32>
    %78 = math.tanh %77 : vector<2x64xf32>
    %79 = vector.extract_strided_slice %76 {offsets = [0, 0], sizes = [2, 64], strides = [1, 1]} : vector<2x192xf32> to vector<2x64xf32>
    %80 = vector.extract_strided_slice %76 {offsets = [0, 64], sizes = [2, 64], strides = [1, 1]} : vector<2x192xf32> to vector<2x64xf32>
    %81 = vector.extract_strided_slice %76 {offsets = [0, 128], sizes = [2, 64], strides = [1, 1]} : vector<2x192xf32> to vector<2x64xf32>
    %82 = arith.mulf %80, %61 : vector<2x64xf32>
    %83 = arith.mulf %79, %78 : vector<2x64xf32>
    %84 = arith.addf %82, %83 : vector<2x64xf32>
    %85 = math.tanh %84 : vector<2x64xf32>
    %86 = arith.mulf %81, %85 : vector<2x64xf32>
    %87 = arith.truncf %86 : vector<2x64xf32> to vector<2x64xbf16>
    %cst_21 = arith.constant dense<0.000000e+00> : vector<2x256xf32>
    %88 = tpu.matmul %87, %9, %cst_21 {dimension_numbers = #tpu.dot_dimension_numbers<[1], [0], [0], [1], [0, 0, 1, 1], [], []>} : vector<2x64xbf16>, vector<64x256xbf16>, vector<2x256xf32> -> vector<2x256xf32>
    %89 = vector.broadcast %10 : vector<1x256xf32> to vector<2x256xf32>
    %90 = arith.addf %88, %89 : vector<2x256xf32>
    %91 = vector.extract_strided_slice %7 {offsets = [0, 48], sizes = [2, 16], strides = [1, 1]} : vector<2x256xbf16> to vector<2x16xbf16>
    %cst_22 = arith.constant dense<0.000000e+00> : vector<2x256xf32>
    %92 = tpu.matmul %91, %8, %cst_22 {dimension_numbers = #tpu.dot_dimension_numbers<[1], [0], [0], [1], [0, 0, 1, 1], [], []>} : vector<2x16xbf16>, vector<16x256xbf16>, vector<2x256xf32> -> vector<2x256xf32>
    %93 = arith.addf %90, %92 : vector<2x256xf32>
    %94 = vector.extract_strided_slice %93 {offsets = [0, 0], sizes = [2, 192], strides = [1, 1]} : vector<2x256xf32> to vector<2x192xf32>
    %95 = arith.negf %94 : vector<2x192xf32>
    %96 = math.exp %95 : vector<2x192xf32>
    %cst_23 = arith.constant 1.000000e+00 : f32
    %97 = vector.broadcast %cst_23 : f32 to vector<2x192xf32>
    %98 = arith.addf %97, %96 : vector<2x192xf32>
    %99 = arith.divf %97, %98 : vector<2x192xf32>
    %100 = vector.extract_strided_slice %93 {offsets = [0, 192], sizes = [2, 64], strides = [1, 1]} : vector<2x256xf32> to vector<2x64xf32>
    %101 = math.tanh %100 : vector<2x64xf32>
    %102 = vector.extract_strided_slice %99 {offsets = [0, 0], sizes = [2, 64], strides = [1, 1]} : vector<2x192xf32> to vector<2x64xf32>
    %103 = vector.extract_strided_slice %99 {offsets = [0, 64], sizes = [2, 64], strides = [1, 1]} : vector<2x192xf32> to vector<2x64xf32>
    %104 = vector.extract_strided_slice %99 {offsets = [0, 128], sizes = [2, 64], strides = [1, 1]} : vector<2x192xf32> to vector<2x64xf32>
    %105 = arith.mulf %103, %84 : vector<2x64xf32>
    %106 = arith.mulf %102, %101 : vector<2x64xf32>
    %107 = arith.addf %105, %106 : vector<2x64xf32>
    %108 = math.tanh %107 : vector<2x64xf32>
    %109 = arith.mulf %104, %108 : vector<2x64xf32>
    %110 = arith.truncf %109 : vector<2x64xf32> to vector<2x64xbf16>
    %cst_24 = arith.constant dense<0.000000e+00> : vector<2x256xf32>
    %111 = tpu.matmul %110, %9, %cst_24 {dimension_numbers = #tpu.dot_dimension_numbers<[1], [0], [0], [1], [0, 0, 1, 1], [], []>} : vector<2x64xbf16>, vector<64x256xbf16>, vector<2x256xf32> -> vector<2x256xf32>
    %112 = vector.broadcast %10 : vector<1x256xf32> to vector<2x256xf32>
    %113 = arith.addf %111, %112 : vector<2x256xf32>
    %114 = vector.extract_strided_slice %7 {offsets = [0, 64], sizes = [2, 16], strides = [1, 1]} : vector<2x256xbf16> to vector<2x16xbf16>
    %cst_25 = arith.constant dense<0.000000e+00> : vector<2x256xf32>
    %115 = tpu.matmul %114, %8, %cst_25 {dimension_numbers = #tpu.dot_dimension_numbers<[1], [0], [0], [1], [0, 0, 1, 1], [], []>} : vector<2x16xbf16>, vector<16x256xbf16>, vector<2x256xf32> -> vector<2x256xf32>
    %116 = arith.addf %113, %115 : vector<2x256xf32>
    %117 = vector.extract_strided_slice %116 {offsets = [0, 0], sizes = [2, 192], strides = [1, 1]} : vector<2x256xf32> to vector<2x192xf32>
    %118 = arith.negf %117 : vector<2x192xf32>
    %119 = math.exp %118 : vector<2x192xf32>
    %cst_26 = arith.constant 1.000000e+00 : f32
    %120 = vector.broadcast %cst_26 : f32 to vector<2x192xf32>
    %121 = arith.addf %120, %119 : vector<2x192xf32>
    %122 = arith.divf %120, %121 : vector<2x192xf32>
    %123 = vector.extract_strided_slice %116 {offsets = [0, 192], sizes = [2, 64], strides = [1, 1]} : vector<2x256xf32> to vector<2x64xf32>
    %124 = math.tanh %123 : vector<2x64xf32>
    %125 = vector.extract_strided_slice %122 {offsets = [0, 0], sizes = [2, 64], strides = [1, 1]} : vector<2x192xf32> to vector<2x64xf32>
    %126 = vector.extract_strided_slice %122 {offsets = [0, 64], sizes = [2, 64], strides = [1, 1]} : vector<2x192xf32> to vector<2x64xf32>
    %127 = vector.extract_strided_slice %122 {offsets = [0, 128], sizes = [2, 64], strides = [1, 1]} : vector<2x192xf32> to vector<2x64xf32>
    %128 = arith.mulf %126, %107 : vector<2x64xf32>
    %129 = arith.mulf %125, %124 : vector<2x64xf32>
    %130 = arith.addf %128, %129 : vector<2x64xf32>
    %131 = math.tanh %130 : vector<2x64xf32>
    %132 = arith.mulf %127, %131 : vector<2x64xf32>
    %133 = arith.truncf %132 : vector<2x64xf32> to vector<2x64xbf16>
    %cst_27 = arith.constant dense<0.000000e+00> : vector<2x256xf32>
    %134 = tpu.matmul %133, %9, %cst_27 {dimension_numbers = #tpu.dot_dimension_numbers<[1], [0], [0], [1], [0, 0, 1, 1], [], []>} : vector<2x64xbf16>, vector<64x256xbf16>, vector<2x256xf32> -> vector<2x256xf32>
    %135 = vector.broadcast %10 : vector<1x256xf32> to vector<2x256xf32>
    %136 = arith.addf %134, %135 : vector<2x256xf32>
    %137 = vector.extract_strided_slice %7 {offsets = [0, 80], sizes = [2, 16], strides = [1, 1]} : vector<2x256xbf16> to vector<2x16xbf16>
    %cst_28 = arith.constant dense<0.000000e+00> : vector<2x256xf32>
    %138 = tpu.matmul %137, %8, %cst_28 {dimension_numbers = #tpu.dot_dimension_numbers<[1], [0], [0], [1], [0, 0, 1, 1], [], []>} : vector<2x16xbf16>, vector<16x256xbf16>, vector<2x256xf32> -> vector<2x256xf32>
    %139 = arith.addf %136, %138 : vector<2x256xf32>
    %140 = vector.extract_strided_slice %139 {offsets = [0, 0], sizes = [2, 192], strides = [1, 1]} : vector<2x256xf32> to vector<2x192xf32>
    %141 = arith.negf %140 : vector<2x192xf32>
    %142 = math.exp %141 : vector<2x192xf32>
    %cst_29 = arith.constant 1.000000e+00 : f32
    %143 = vector.broadcast %cst_29 : f32 to vector<2x192xf32>
    %144 = arith.addf %143, %142 : vector<2x192xf32>
    %145 = arith.divf %143, %144 : vector<2x192xf32>
    %146 = vector.extract_strided_slice %139 {offsets = [0, 192], sizes = [2, 64], strides = [1, 1]} : vector<2x256xf32> to vector<2x64xf32>
    %147 = math.tanh %146 : vector<2x64xf32>
    %148 = vector.extract_strided_slice %145 {offsets = [0, 0], sizes = [2, 64], strides = [1, 1]} : vector<2x192xf32> to vector<2x64xf32>
    %149 = vector.extract_strided_slice %145 {offsets = [0, 64], sizes = [2, 64], strides = [1, 1]} : vector<2x192xf32> to vector<2x64xf32>
    %150 = vector.extract_strided_slice %145 {offsets = [0, 128], sizes = [2, 64], strides = [1, 1]} : vector<2x192xf32> to vector<2x64xf32>
    %151 = arith.mulf %149, %130 : vector<2x64xf32>
    %152 = arith.mulf %148, %147 : vector<2x64xf32>
    %153 = arith.addf %151, %152 : vector<2x64xf32>
    %154 = math.tanh %153 : vector<2x64xf32>
    %155 = arith.mulf %150, %154 : vector<2x64xf32>
    %156 = arith.truncf %155 : vector<2x64xf32> to vector<2x64xbf16>
    %cst_30 = arith.constant dense<0.000000e+00> : vector<2x256xf32>
    %157 = tpu.matmul %156, %9, %cst_30 {dimension_numbers = #tpu.dot_dimension_numbers<[1], [0], [0], [1], [0, 0, 1, 1], [], []>} : vector<2x64xbf16>, vector<64x256xbf16>, vector<2x256xf32> -> vector<2x256xf32>
    %158 = vector.broadcast %10 : vector<1x256xf32> to vector<2x256xf32>
    %159 = arith.addf %157, %158 : vector<2x256xf32>
    %160 = vector.extract_strided_slice %7 {offsets = [0, 96], sizes = [2, 16], strides = [1, 1]} : vector<2x256xbf16> to vector<2x16xbf16>
    %cst_31 = arith.constant dense<0.000000e+00> : vector<2x256xf32>
    %161 = tpu.matmul %160, %8, %cst_31 {dimension_numbers = #tpu.dot_dimension_numbers<[1], [0], [0], [1], [0, 0, 1, 1], [], []>} : vector<2x16xbf16>, vector<16x256xbf16>, vector<2x256xf32> -> vector<2x256xf32>
    %162 = arith.addf %159, %161 : vector<2x256xf32>
    %163 = vector.extract_strided_slice %162 {offsets = [0, 0], sizes = [2, 192], strides = [1, 1]} : vector<2x256xf32> to vector<2x192xf32>
    %164 = arith.negf %163 : vector<2x192xf32>
    %165 = math.exp %164 : vector<2x192xf32>
    %cst_32 = arith.constant 1.000000e+00 : f32
    %166 = vector.broadcast %cst_32 : f32 to vector<2x192xf32>
    %167 = arith.addf %166, %165 : vector<2x192xf32>
    %168 = arith.divf %166, %167 : vector<2x192xf32>
    %169 = vector.extract_strided_slice %162 {offsets = [0, 192], sizes = [2, 64], strides = [1, 1]} : vector<2x256xf32> to vector<2x64xf32>
    %170 = math.tanh %169 : vector<2x64xf32>
    %171 = vector.extract_strided_slice %168 {offsets = [0, 0], sizes = [2, 64], strides = [1, 1]} : vector<2x192xf32> to vector<2x64xf32>
    %172 = vector.extract_strided_slice %168 {offsets = [0, 64], sizes = [2, 64], strides = [1, 1]} : vector<2x192xf32> to vector<2x64xf32>
    %173 = vector.extract_strided_slice %168 {offsets = [0, 128], sizes = [2, 64], strides = [1, 1]} : vector<2x192xf32> to vector<2x64xf32>
    %174 = arith.mulf %172, %153 : vector<2x64xf32>
    %175 = arith.mulf %171, %170 : vector<2x64xf32>
    %176 = arith.addf %174, %175 : vector<2x64xf32>
    %177 = math.tanh %176 : vector<2x64xf32>
    %178 = arith.mulf %173, %177 : vector<2x64xf32>
    %179 = arith.truncf %178 : vector<2x64xf32> to vector<2x64xbf16>
    %cst_33 = arith.constant dense<0.000000e+00> : vector<2x256xf32>
    %180 = tpu.matmul %179, %9, %cst_33 {dimension_numbers = #tpu.dot_dimension_numbers<[1], [0], [0], [1], [0, 0, 1, 1], [], []>} : vector<2x64xbf16>, vector<64x256xbf16>, vector<2x256xf32> -> vector<2x256xf32>
    %181 = vector.broadcast %10 : vector<1x256xf32> to vector<2x256xf32>
    %182 = arith.addf %180, %181 : vector<2x256xf32>
    %183 = vector.extract_strided_slice %7 {offsets = [0, 112], sizes = [2, 16], strides = [1, 1]} : vector<2x256xbf16> to vector<2x16xbf16>
    %cst_34 = arith.constant dense<0.000000e+00> : vector<2x256xf32>
    %184 = tpu.matmul %183, %8, %cst_34 {dimension_numbers = #tpu.dot_dimension_numbers<[1], [0], [0], [1], [0, 0, 1, 1], [], []>} : vector<2x16xbf16>, vector<16x256xbf16>, vector<2x256xf32> -> vector<2x256xf32>
    %185 = arith.addf %182, %184 : vector<2x256xf32>
    %186 = vector.extract_strided_slice %185 {offsets = [0, 0], sizes = [2, 192], strides = [1, 1]} : vector<2x256xf32> to vector<2x192xf32>
    %187 = arith.negf %186 : vector<2x192xf32>
    %188 = math.exp %187 : vector<2x192xf32>
    %cst_35 = arith.constant 1.000000e+00 : f32
    %189 = vector.broadcast %cst_35 : f32 to vector<2x192xf32>
    %190 = arith.addf %189, %188 : vector<2x192xf32>
    %191 = arith.divf %189, %190 : vector<2x192xf32>
    %192 = vector.extract_strided_slice %185 {offsets = [0, 192], sizes = [2, 64], strides = [1, 1]} : vector<2x256xf32> to vector<2x64xf32>
    %193 = math.tanh %192 : vector<2x64xf32>
    %194 = vector.extract_strided_slice %191 {offsets = [0, 0], sizes = [2, 64], strides = [1, 1]} : vector<2x192xf32> to vector<2x64xf32>
    %195 = vector.extract_strided_slice %191 {offsets = [0, 64], sizes = [2, 64], strides = [1, 1]} : vector<2x192xf32> to vector<2x64xf32>
    %196 = vector.extract_strided_slice %191 {offsets = [0, 128], sizes = [2, 64], strides = [1, 1]} : vector<2x192xf32> to vector<2x64xf32>
    %197 = arith.mulf %195, %176 : vector<2x64xf32>
    %198 = arith.mulf %194, %193 : vector<2x64xf32>
    %199 = arith.addf %197, %198 : vector<2x64xf32>
    %200 = math.tanh %199 : vector<2x64xf32>
    %201 = arith.mulf %196, %200 : vector<2x64xf32>
    %202 = arith.truncf %201 : vector<2x64xf32> to vector<2x64xbf16>
    %cst_36 = arith.constant dense<0.000000e+00> : vector<2x256xf32>
    %203 = tpu.matmul %202, %9, %cst_36 {dimension_numbers = #tpu.dot_dimension_numbers<[1], [0], [0], [1], [0, 0, 1, 1], [], []>} : vector<2x64xbf16>, vector<64x256xbf16>, vector<2x256xf32> -> vector<2x256xf32>
    %204 = vector.broadcast %10 : vector<1x256xf32> to vector<2x256xf32>
    %205 = arith.addf %203, %204 : vector<2x256xf32>
    %206 = vector.extract_strided_slice %7 {offsets = [0, 128], sizes = [2, 16], strides = [1, 1]} : vector<2x256xbf16> to vector<2x16xbf16>
    %cst_37 = arith.constant dense<0.000000e+00> : vector<2x256xf32>
    %207 = tpu.matmul %206, %8, %cst_37 {dimension_numbers = #tpu.dot_dimension_numbers<[1], [0], [0], [1], [0, 0, 1, 1], [], []>} : vector<2x16xbf16>, vector<16x256xbf16>, vector<2x256xf32> -> vector<2x256xf32>
    %208 = arith.addf %205, %207 : vector<2x256xf32>
    %209 = vector.extract_strided_slice %208 {offsets = [0, 0], sizes = [2, 192], strides = [1, 1]} : vector<2x256xf32> to vector<2x192xf32>
    %210 = arith.negf %209 : vector<2x192xf32>
    %211 = math.exp %210 : vector<2x192xf32>
    %cst_38 = arith.constant 1.000000e+00 : f32
    %212 = vector.broadcast %cst_38 : f32 to vector<2x192xf32>
    %213 = arith.addf %212, %211 : vector<2x192xf32>
    %214 = arith.divf %212, %213 : vector<2x192xf32>
    %215 = vector.extract_strided_slice %208 {offsets = [0, 192], sizes = [2, 64], strides = [1, 1]} : vector<2x256xf32> to vector<2x64xf32>
    %216 = math.tanh %215 : vector<2x64xf32>
    %217 = vector.extract_strided_slice %214 {offsets = [0, 0], sizes = [2, 64], strides = [1, 1]} : vector<2x192xf32> to vector<2x64xf32>
    %218 = vector.extract_strided_slice %214 {offsets = [0, 64], sizes = [2, 64], strides = [1, 1]} : vector<2x192xf32> to vector<2x64xf32>
    %219 = vector.extract_strided_slice %214 {offsets = [0, 128], sizes = [2, 64], strides = [1, 1]} : vector<2x192xf32> to vector<2x64xf32>
    %220 = arith.mulf %218, %199 : vector<2x64xf32>
    %221 = arith.mulf %217, %216 : vector<2x64xf32>
    %222 = arith.addf %220, %221 : vector<2x64xf32>
    %223 = math.tanh %222 : vector<2x64xf32>
    %224 = arith.mulf %219, %223 : vector<2x64xf32>
    %225 = arith.truncf %224 : vector<2x64xf32> to vector<2x64xbf16>
    %cst_39 = arith.constant dense<0.000000e+00> : vector<2x256xf32>
    %226 = tpu.matmul %225, %9, %cst_39 {dimension_numbers = #tpu.dot_dimension_numbers<[1], [0], [0], [1], [0, 0, 1, 1], [], []>} : vector<2x64xbf16>, vector<64x256xbf16>, vector<2x256xf32> -> vector<2x256xf32>
    %227 = vector.broadcast %10 : vector<1x256xf32> to vector<2x256xf32>
    %228 = arith.addf %226, %227 : vector<2x256xf32>
    %229 = vector.extract_strided_slice %7 {offsets = [0, 144], sizes = [2, 16], strides = [1, 1]} : vector<2x256xbf16> to vector<2x16xbf16>
    %cst_40 = arith.constant dense<0.000000e+00> : vector<2x256xf32>
    %230 = tpu.matmul %229, %8, %cst_40 {dimension_numbers = #tpu.dot_dimension_numbers<[1], [0], [0], [1], [0, 0, 1, 1], [], []>} : vector<2x16xbf16>, vector<16x256xbf16>, vector<2x256xf32> -> vector<2x256xf32>
    %231 = arith.addf %228, %230 : vector<2x256xf32>
    %232 = vector.extract_strided_slice %231 {offsets = [0, 0], sizes = [2, 192], strides = [1, 1]} : vector<2x256xf32> to vector<2x192xf32>
    %233 = arith.negf %232 : vector<2x192xf32>
    %234 = math.exp %233 : vector<2x192xf32>
    %cst_41 = arith.constant 1.000000e+00 : f32
    %235 = vector.broadcast %cst_41 : f32 to vector<2x192xf32>
    %236 = arith.addf %235, %234 : vector<2x192xf32>
    %237 = arith.divf %235, %236 : vector<2x192xf32>
    %238 = vector.extract_strided_slice %231 {offsets = [0, 192], sizes = [2, 64], strides = [1, 1]} : vector<2x256xf32> to vector<2x64xf32>
    %239 = math.tanh %238 : vector<2x64xf32>
    %240 = vector.extract_strided_slice %237 {offsets = [0, 0], sizes = [2, 64], strides = [1, 1]} : vector<2x192xf32> to vector<2x64xf32>
    %241 = vector.extract_strided_slice %237 {offsets = [0, 64], sizes = [2, 64], strides = [1, 1]} : vector<2x192xf32> to vector<2x64xf32>
    %242 = vector.extract_strided_slice %237 {offsets = [0, 128], sizes = [2, 64], strides = [1, 1]} : vector<2x192xf32> to vector<2x64xf32>
    %243 = arith.mulf %241, %222 : vector<2x64xf32>
    %244 = arith.mulf %240, %239 : vector<2x64xf32>
    %245 = arith.addf %243, %244 : vector<2x64xf32>
    %246 = math.tanh %245 : vector<2x64xf32>
    %247 = arith.mulf %242, %246 : vector<2x64xf32>
    %248 = arith.truncf %247 : vector<2x64xf32> to vector<2x64xbf16>
    %cst_42 = arith.constant dense<0.000000e+00> : vector<2x256xf32>
    %249 = tpu.matmul %248, %9, %cst_42 {dimension_numbers = #tpu.dot_dimension_numbers<[1], [0], [0], [1], [0, 0, 1, 1], [], []>} : vector<2x64xbf16>, vector<64x256xbf16>, vector<2x256xf32> -> vector<2x256xf32>
    %250 = vector.broadcast %10 : vector<1x256xf32> to vector<2x256xf32>
    %251 = arith.addf %249, %250 : vector<2x256xf32>
    %252 = vector.extract_strided_slice %7 {offsets = [0, 160], sizes = [2, 16], strides = [1, 1]} : vector<2x256xbf16> to vector<2x16xbf16>
    %cst_43 = arith.constant dense<0.000000e+00> : vector<2x256xf32>
    %253 = tpu.matmul %252, %8, %cst_43 {dimension_numbers = #tpu.dot_dimension_numbers<[1], [0], [0], [1], [0, 0, 1, 1], [], []>} : vector<2x16xbf16>, vector<16x256xbf16>, vector<2x256xf32> -> vector<2x256xf32>
    %254 = arith.addf %251, %253 : vector<2x256xf32>
    %255 = vector.extract_strided_slice %254 {offsets = [0, 0], sizes = [2, 192], strides = [1, 1]} : vector<2x256xf32> to vector<2x192xf32>
    %256 = arith.negf %255 : vector<2x192xf32>
    %257 = math.exp %256 : vector<2x192xf32>
    %cst_44 = arith.constant 1.000000e+00 : f32
    %258 = vector.broadcast %cst_44 : f32 to vector<2x192xf32>
    %259 = arith.addf %258, %257 : vector<2x192xf32>
    %260 = arith.divf %258, %259 : vector<2x192xf32>
    %261 = vector.extract_strided_slice %254 {offsets = [0, 192], sizes = [2, 64], strides = [1, 1]} : vector<2x256xf32> to vector<2x64xf32>
    %262 = math.tanh %261 : vector<2x64xf32>
    %263 = vector.extract_strided_slice %260 {offsets = [0, 0], sizes = [2, 64], strides = [1, 1]} : vector<2x192xf32> to vector<2x64xf32>
    %264 = vector.extract_strided_slice %260 {offsets = [0, 64], sizes = [2, 64], strides = [1, 1]} : vector<2x192xf32> to vector<2x64xf32>
    %265 = vector.extract_strided_slice %260 {offsets = [0, 128], sizes = [2, 64], strides = [1, 1]} : vector<2x192xf32> to vector<2x64xf32>
    %266 = arith.mulf %264, %245 : vector<2x64xf32>
    %267 = arith.mulf %263, %262 : vector<2x64xf32>
    %268 = arith.addf %266, %267 : vector<2x64xf32>
    %269 = math.tanh %268 : vector<2x64xf32>
    %270 = arith.mulf %265, %269 : vector<2x64xf32>
    %271 = arith.truncf %270 : vector<2x64xf32> to vector<2x64xbf16>
    %cst_45 = arith.constant dense<0.000000e+00> : vector<2x256xf32>
    %272 = tpu.matmul %271, %9, %cst_45 {dimension_numbers = #tpu.dot_dimension_numbers<[1], [0], [0], [1], [0, 0, 1, 1], [], []>} : vector<2x64xbf16>, vector<64x256xbf16>, vector<2x256xf32> -> vector<2x256xf32>
    %273 = vector.broadcast %10 : vector<1x256xf32> to vector<2x256xf32>
    %274 = arith.addf %272, %273 : vector<2x256xf32>
    %275 = vector.extract_strided_slice %7 {offsets = [0, 176], sizes = [2, 16], strides = [1, 1]} : vector<2x256xbf16> to vector<2x16xbf16>
    %cst_46 = arith.constant dense<0.000000e+00> : vector<2x256xf32>
    %276 = tpu.matmul %275, %8, %cst_46 {dimension_numbers = #tpu.dot_dimension_numbers<[1], [0], [0], [1], [0, 0, 1, 1], [], []>} : vector<2x16xbf16>, vector<16x256xbf16>, vector<2x256xf32> -> vector<2x256xf32>
    %277 = arith.addf %274, %276 : vector<2x256xf32>
    %278 = vector.extract_strided_slice %277 {offsets = [0, 0], sizes = [2, 192], strides = [1, 1]} : vector<2x256xf32> to vector<2x192xf32>
    %279 = arith.negf %278 : vector<2x192xf32>
    %280 = math.exp %279 : vector<2x192xf32>
    %cst_47 = arith.constant 1.000000e+00 : f32
    %281 = vector.broadcast %cst_47 : f32 to vector<2x192xf32>
    %282 = arith.addf %281, %280 : vector<2x192xf32>
    %283 = arith.divf %281, %282 : vector<2x192xf32>
    %284 = vector.extract_strided_slice %277 {offsets = [0, 192], sizes = [2, 64], strides = [1, 1]} : vector<2x256xf32> to vector<2x64xf32>
    %285 = math.tanh %284 : vector<2x64xf32>
    %286 = vector.extract_strided_slice %283 {offsets = [0, 0], sizes = [2, 64], strides = [1, 1]} : vector<2x192xf32> to vector<2x64xf32>
    %287 = vector.extract_strided_slice %283 {offsets = [0, 64], sizes = [2, 64], strides = [1, 1]} : vector<2x192xf32> to vector<2x64xf32>
    %288 = vector.extract_strided_slice %283 {offsets = [0, 128], sizes = [2, 64], strides = [1, 1]} : vector<2x192xf32> to vector<2x64xf32>
    %289 = arith.mulf %287, %268 : vector<2x64xf32>
    %290 = arith.mulf %286, %285 : vector<2x64xf32>
    %291 = arith.addf %289, %290 : vector<2x64xf32>
    %292 = math.tanh %291 : vector<2x64xf32>
    %293 = arith.mulf %288, %292 : vector<2x64xf32>
    %294 = arith.truncf %293 : vector<2x64xf32> to vector<2x64xbf16>
    %cst_48 = arith.constant dense<0.000000e+00> : vector<2x256xf32>
    %295 = tpu.matmul %294, %9, %cst_48 {dimension_numbers = #tpu.dot_dimension_numbers<[1], [0], [0], [1], [0, 0, 1, 1], [], []>} : vector<2x64xbf16>, vector<64x256xbf16>, vector<2x256xf32> -> vector<2x256xf32>
    %296 = vector.broadcast %10 : vector<1x256xf32> to vector<2x256xf32>
    %297 = arith.addf %295, %296 : vector<2x256xf32>
    %298 = vector.extract_strided_slice %7 {offsets = [0, 192], sizes = [2, 16], strides = [1, 1]} : vector<2x256xbf16> to vector<2x16xbf16>
    %cst_49 = arith.constant dense<0.000000e+00> : vector<2x256xf32>
    %299 = tpu.matmul %298, %8, %cst_49 {dimension_numbers = #tpu.dot_dimension_numbers<[1], [0], [0], [1], [0, 0, 1, 1], [], []>} : vector<2x16xbf16>, vector<16x256xbf16>, vector<2x256xf32> -> vector<2x256xf32>
    %300 = arith.addf %297, %299 : vector<2x256xf32>
    %301 = vector.extract_strided_slice %300 {offsets = [0, 0], sizes = [2, 192], strides = [1, 1]} : vector<2x256xf32> to vector<2x192xf32>
    %302 = arith.negf %301 : vector<2x192xf32>
    %303 = math.exp %302 : vector<2x192xf32>
    %cst_50 = arith.constant 1.000000e+00 : f32
    %304 = vector.broadcast %cst_50 : f32 to vector<2x192xf32>
    %305 = arith.addf %304, %303 : vector<2x192xf32>
    %306 = arith.divf %304, %305 : vector<2x192xf32>
    %307 = vector.extract_strided_slice %300 {offsets = [0, 192], sizes = [2, 64], strides = [1, 1]} : vector<2x256xf32> to vector<2x64xf32>
    %308 = math.tanh %307 : vector<2x64xf32>
    %309 = vector.extract_strided_slice %306 {offsets = [0, 0], sizes = [2, 64], strides = [1, 1]} : vector<2x192xf32> to vector<2x64xf32>
    %310 = vector.extract_strided_slice %306 {offsets = [0, 64], sizes = [2, 64], strides = [1, 1]} : vector<2x192xf32> to vector<2x64xf32>
    %311 = vector.extract_strided_slice %306 {offsets = [0, 128], sizes = [2, 64], strides = [1, 1]} : vector<2x192xf32> to vector<2x64xf32>
    %312 = arith.mulf %310, %291 : vector<2x64xf32>
    %313 = arith.mulf %309, %308 : vector<2x64xf32>
    %314 = arith.addf %312, %313 : vector<2x64xf32>
    %315 = math.tanh %314 : vector<2x64xf32>
    %316 = arith.mulf %311, %315 : vector<2x64xf32>
    %317 = arith.truncf %316 : vector<2x64xf32> to vector<2x64xbf16>
    %cst_51 = arith.constant dense<0.000000e+00> : vector<2x256xf32>
    %318 = tpu.matmul %317, %9, %cst_51 {dimension_numbers = #tpu.dot_dimension_numbers<[1], [0], [0], [1], [0, 0, 1, 1], [], []>} : vector<2x64xbf16>, vector<64x256xbf16>, vector<2x256xf32> -> vector<2x256xf32>
    %319 = vector.broadcast %10 : vector<1x256xf32> to vector<2x256xf32>
    %320 = arith.addf %318, %319 : vector<2x256xf32>
    %321 = vector.extract_strided_slice %7 {offsets = [0, 208], sizes = [2, 16], strides = [1, 1]} : vector<2x256xbf16> to vector<2x16xbf16>
    %cst_52 = arith.constant dense<0.000000e+00> : vector<2x256xf32>
    %322 = tpu.matmul %321, %8, %cst_52 {dimension_numbers = #tpu.dot_dimension_numbers<[1], [0], [0], [1], [0, 0, 1, 1], [], []>} : vector<2x16xbf16>, vector<16x256xbf16>, vector<2x256xf32> -> vector<2x256xf32>
    %323 = arith.addf %320, %322 : vector<2x256xf32>
    %324 = vector.extract_strided_slice %323 {offsets = [0, 0], sizes = [2, 192], strides = [1, 1]} : vector<2x256xf32> to vector<2x192xf32>
    %325 = arith.negf %324 : vector<2x192xf32>
    %326 = math.exp %325 : vector<2x192xf32>
    %cst_53 = arith.constant 1.000000e+00 : f32
    %327 = vector.broadcast %cst_53 : f32 to vector<2x192xf32>
    %328 = arith.addf %327, %326 : vector<2x192xf32>
    %329 = arith.divf %327, %328 : vector<2x192xf32>
    %330 = vector.extract_strided_slice %323 {offsets = [0, 192], sizes = [2, 64], strides = [1, 1]} : vector<2x256xf32> to vector<2x64xf32>
    %331 = math.tanh %330 : vector<2x64xf32>
    %332 = vector.extract_strided_slice %329 {offsets = [0, 0], sizes = [2, 64], strides = [1, 1]} : vector<2x192xf32> to vector<2x64xf32>
    %333 = vector.extract_strided_slice %329 {offsets = [0, 64], sizes = [2, 64], strides = [1, 1]} : vector<2x192xf32> to vector<2x64xf32>
    %334 = vector.extract_strided_slice %329 {offsets = [0, 128], sizes = [2, 64], strides = [1, 1]} : vector<2x192xf32> to vector<2x64xf32>
    %335 = arith.mulf %333, %314 : vector<2x64xf32>
    %336 = arith.mulf %332, %331 : vector<2x64xf32>
    %337 = arith.addf %335, %336 : vector<2x64xf32>
    %338 = math.tanh %337 : vector<2x64xf32>
    %339 = arith.mulf %334, %338 : vector<2x64xf32>
    %340 = arith.truncf %339 : vector<2x64xf32> to vector<2x64xbf16>
    %cst_54 = arith.constant dense<0.000000e+00> : vector<2x256xf32>
    %341 = tpu.matmul %340, %9, %cst_54 {dimension_numbers = #tpu.dot_dimension_numbers<[1], [0], [0], [1], [0, 0, 1, 1], [], []>} : vector<2x64xbf16>, vector<64x256xbf16>, vector<2x256xf32> -> vector<2x256xf32>
    %342 = vector.broadcast %10 : vector<1x256xf32> to vector<2x256xf32>
    %343 = arith.addf %341, %342 : vector<2x256xf32>
    %344 = vector.extract_strided_slice %7 {offsets = [0, 224], sizes = [2, 16], strides = [1, 1]} : vector<2x256xbf16> to vector<2x16xbf16>
    %cst_55 = arith.constant dense<0.000000e+00> : vector<2x256xf32>
    %345 = tpu.matmul %344, %8, %cst_55 {dimension_numbers = #tpu.dot_dimension_numbers<[1], [0], [0], [1], [0, 0, 1, 1], [], []>} : vector<2x16xbf16>, vector<16x256xbf16>, vector<2x256xf32> -> vector<2x256xf32>
    %346 = arith.addf %343, %345 : vector<2x256xf32>
    %347 = vector.extract_strided_slice %346 {offsets = [0, 0], sizes = [2, 192], strides = [1, 1]} : vector<2x256xf32> to vector<2x192xf32>
    %348 = arith.negf %347 : vector<2x192xf32>
    %349 = math.exp %348 : vector<2x192xf32>
    %cst_56 = arith.constant 1.000000e+00 : f32
    %350 = vector.broadcast %cst_56 : f32 to vector<2x192xf32>
    %351 = arith.addf %350, %349 : vector<2x192xf32>
    %352 = arith.divf %350, %351 : vector<2x192xf32>
    %353 = vector.extract_strided_slice %346 {offsets = [0, 192], sizes = [2, 64], strides = [1, 1]} : vector<2x256xf32> to vector<2x64xf32>
    %354 = math.tanh %353 : vector<2x64xf32>
    %355 = vector.extract_strided_slice %352 {offsets = [0, 0], sizes = [2, 64], strides = [1, 1]} : vector<2x192xf32> to vector<2x64xf32>
    %356 = vector.extract_strided_slice %352 {offsets = [0, 64], sizes = [2, 64], strides = [1, 1]} : vector<2x192xf32> to vector<2x64xf32>
    %357 = vector.extract_strided_slice %352 {offsets = [0, 128], sizes = [2, 64], strides = [1, 1]} : vector<2x192xf32> to vector<2x64xf32>
    %358 = arith.mulf %356, %337 : vector<2x64xf32>
    %359 = arith.mulf %355, %354 : vector<2x64xf32>
    %360 = arith.addf %358, %359 : vector<2x64xf32>
    %361 = math.tanh %360 : vector<2x64xf32>
    %362 = arith.mulf %357, %361 : vector<2x64xf32>
    %363 = arith.truncf %362 : vector<2x64xf32> to vector<2x64xbf16>
    %cst_57 = arith.constant dense<0.000000e+00> : vector<2x256xf32>
    %364 = tpu.matmul %363, %9, %cst_57 {dimension_numbers = #tpu.dot_dimension_numbers<[1], [0], [0], [1], [0, 0, 1, 1], [], []>} : vector<2x64xbf16>, vector<64x256xbf16>, vector<2x256xf32> -> vector<2x256xf32>
    %365 = vector.broadcast %10 : vector<1x256xf32> to vector<2x256xf32>
    %366 = arith.addf %364, %365 : vector<2x256xf32>
    %367 = vector.extract_strided_slice %7 {offsets = [0, 240], sizes = [2, 16], strides = [1, 1]} : vector<2x256xbf16> to vector<2x16xbf16>
    %cst_58 = arith.constant dense<0.000000e+00> : vector<2x256xf32>
    %368 = tpu.matmul %367, %8, %cst_58 {dimension_numbers = #tpu.dot_dimension_numbers<[1], [0], [0], [1], [0, 0, 1, 1], [], []>} : vector<2x16xbf16>, vector<16x256xbf16>, vector<2x256xf32> -> vector<2x256xf32>
    %369 = arith.addf %366, %368 : vector<2x256xf32>
    %370 = vector.extract_strided_slice %369 {offsets = [0, 0], sizes = [2, 192], strides = [1, 1]} : vector<2x256xf32> to vector<2x192xf32>
    %371 = arith.negf %370 : vector<2x192xf32>
    %372 = math.exp %371 : vector<2x192xf32>
    %cst_59 = arith.constant 1.000000e+00 : f32
    %373 = vector.broadcast %cst_59 : f32 to vector<2x192xf32>
    %374 = arith.addf %373, %372 : vector<2x192xf32>
    %375 = arith.divf %373, %374 : vector<2x192xf32>
    %376 = vector.extract_strided_slice %369 {offsets = [0, 192], sizes = [2, 64], strides = [1, 1]} : vector<2x256xf32> to vector<2x64xf32>
    %377 = math.tanh %376 : vector<2x64xf32>
    %378 = vector.extract_strided_slice %375 {offsets = [0, 0], sizes = [2, 64], strides = [1, 1]} : vector<2x192xf32> to vector<2x64xf32>
    %379 = vector.extract_strided_slice %375 {offsets = [0, 64], sizes = [2, 64], strides = [1, 1]} : vector<2x192xf32> to vector<2x64xf32>
    %380 = vector.extract_strided_slice %375 {offsets = [0, 128], sizes = [2, 64], strides = [1, 1]} : vector<2x192xf32> to vector<2x64xf32>
    %381 = arith.mulf %379, %360 : vector<2x64xf32>
    %382 = arith.mulf %378, %377 : vector<2x64xf32>
    %383 = arith.addf %381, %382 : vector<2x64xf32>
    %384 = math.tanh %383 : vector<2x64xf32>
    %385 = arith.mulf %380, %384 : vector<2x64xf32>
    %386 = arith.truncf %385 : vector<2x64xf32> to vector<2x64xbf16>
    %cst_60 = arith.constant dense<0.000000e+00> : vector<2x256xf32>
    %387 = tpu.matmul %386, %9, %cst_60 {dimension_numbers = #tpu.dot_dimension_numbers<[1], [0], [0], [1], [0, 0, 1, 1], [], []>} : vector<2x64xbf16>, vector<64x256xbf16>, vector<2x256xf32> -> vector<2x256xf32>
    %388 = vector.broadcast %10 : vector<1x256xf32> to vector<2x256xf32>
    %389 = arith.addf %387, %388 : vector<2x256xf32>
    %390 = vector.extract_strided_slice %389 {offsets = [0, 0], sizes = [2, 192], strides = [1, 1]} : vector<2x256xf32> to vector<2x192xf32>
    %391 = arith.negf %390 : vector<2x192xf32>
    %392 = math.exp %391 : vector<2x192xf32>
    %cst_61 = arith.constant 1.000000e+00 : f32
    %393 = vector.broadcast %cst_61 : f32 to vector<2x192xf32>
    %394 = arith.addf %393, %392 : vector<2x192xf32>
    %395 = arith.divf %393, %394 : vector<2x192xf32>
    %396 = vector.extract_strided_slice %389 {offsets = [0, 192], sizes = [2, 64], strides = [1, 1]} : vector<2x256xf32> to vector<2x64xf32>
    %397 = math.tanh %396 : vector<2x64xf32>
    %398 = vector.extract_strided_slice %395 {offsets = [0, 0], sizes = [2, 64], strides = [1, 1]} : vector<2x192xf32> to vector<2x64xf32>
    %399 = vector.extract_strided_slice %395 {offsets = [0, 64], sizes = [2, 64], strides = [1, 1]} : vector<2x192xf32> to vector<2x64xf32>
    %400 = vector.extract_strided_slice %395 {offsets = [0, 128], sizes = [2, 64], strides = [1, 1]} : vector<2x192xf32> to vector<2x64xf32>
    %401 = arith.mulf %399, %383 : vector<2x64xf32>
    %402 = arith.mulf %398, %397 : vector<2x64xf32>
    %403 = arith.addf %401, %402 : vector<2x64xf32>
    %404 = math.tanh %403 : vector<2x64xf32>
    %405 = arith.mulf %400, %404 : vector<2x64xf32>
    %406 = vector.extract_strided_slice %405 {offsets = [0, 32], sizes = [2, 32], strides = [1, 1]} : vector<2x64xf32> to vector<2x32xf32>
    %c0_62 = arith.constant 0 : index
    %c0_63 = arith.constant 0 : index
    %407 = vector.load %arg6[%c0_62, %c0_63] : memref<1x32xf32, #tpu.memory_space<vmem>>, vector<1x32xf32>
    %408 = vector.broadcast %407 : vector<1x32xf32> to vector<2x32xf32>
    %409 = arith.mulf %406, %408 : vector<2x32xf32>
    %c0_64 = arith.constant 0 : index
    %c0_65 = arith.constant 0 : index
    %410 = vector.load %arg7[%c0_64, %c0_65] : memref<1x32xf32, #tpu.memory_space<vmem>>, vector<1x32xf32>
    %411 = vector.broadcast %410 : vector<1x32xf32> to vector<2x32xf32>
    %412 = arith.addf %409, %411 : vector<2x32xf32>
    %413 = arith.truncf %412 : vector<2x32xf32> to vector<2x32xbf16>
    %c0_66 = arith.constant 0 : index
    %c0_67 = arith.constant 0 : index
    %414 = vector.load %arg8[%c0_66, %c0_67] : memref<32x8xbf16, #tpu.memory_space<vmem>>, vector<32x8xbf16>
    %cst_68 = arith.constant dense<0.000000e+00> : vector<2x8xf32>
    %415 = tpu.matmul %413, %414, %cst_68 {dimension_numbers = #tpu.dot_dimension_numbers<[1], [0], [0], [1], [0, 0, 1, 1], [], []>} : vector<2x32xbf16>, vector<32x8xbf16>, vector<2x8xf32> -> vector<2x8xf32>
    %c0_69 = arith.constant 0 : index
    %c0_70 = arith.constant 0 : index
    %416 = vector.load %arg9[%c0_69, %c0_70] : memref<1x8xf32, #tpu.memory_space<vmem>>, vector<1x8xf32>
    %417 = vector.broadcast %416 : vector<1x8xf32> to vector<2x8xf32>
    %418 = arith.addf %415, %417 : vector<2x8xf32>
    %c0_71 = arith.constant 0 : index
    %c0_72 = arith.constant 0 : index
    %419 = vector.load %arg10[%c0_71, %c0_72] : memref<2x8xf32, #tpu.memory_space<vmem>>, vector<2x8xf32>
    tpu.vector_store %arg10[%c0_71, %c0_72], %418 {strides = array<i32>} : memref<2x8xf32, #tpu.memory_space<vmem>>, vector<2x8xf32>,
    return
  }
}

</mosaic_0001>

<bundles_post_ra>
// kernel: rnn_forward.1
= control target key start
LH: loop header
LB: loop body
LE: loop exit
PB: predicated region body
PF: predicated region fallthrough
CT: control target
= control target key end

     0   :  { %15 = vsyncpa [#allocation3], 0  ;;  %s3587_s0 = inlined_call_operand.vmem [shape: f32[2,256], index: 0, kind: input, shape index: {}]   ;;  %s3588_s1 = inlined_call_operand.vmem [shape: f32[1,256], index: 1, kind: input, shape index: {}]   ;;  %s3589_s2 = inlined_call_operand.hbm [shape: f32[1,256], index: 2, kind: input, shape index: {}]   ;;  %s3590_s3 = inlined_call_operand.vmem [shape: bf16[16,256], index: 3, kind: input, shape index: {}]   ;;  %s3591_s4 = inlined_call_operand.vmem [shape: bf16[64,256], index: 4, kind: input, shape index: {}]   ;;  %s3592_s5 = inlined_call_operand.hbm [shape: f32[1,256], index: 5, kind: input, shape index: {}]   ;;  %s3593_s6 = inlined_call_operand.hbm [shape: f32[1,32], index: 6, kind: input, shape index: {}]   ;;  %s3594_s7 = inlined_call_operand.hbm [shape: f32[1,32], index: 7, kind: input, shape index: {}]   ;;  %s3595_s8 = inlined_call_operand.vmem [shape: bf16[32,8], index: 8, kind: input, shape index: {}]   ;;  %s3596_s9 = inlined_call_operand.hbm [shape: f32[1,8], index: 9, kind: input, shape index: {}]   ;;  %s3597_s10 = inlined_call_operand.hbm [shape: f32[2,8], index: 10, kind: output, shape index: {}]  }
   0x1   :  { %16 = vsyncpa [#allocation6], 0 }
   0x2   :  { %17 = vsyncpa [#allocation9], 0 }
   0x3   :  { %18 = vsyncpa [#allocation4], 0  ;;  %s2961_s13 = smov [#allocation5]   ;;  %s2962_s15 = smov [#allocation8]  }
   0x4   :  { %s43_s14 = sshll.u32 %s2961_s13, 4  ;;  %s63_s16 = sshll.u32 %s2962_s15, 4  ;;  %s44_s14 = int_to_ptr.vmem [resolvable:$true] %s43_s14  ;;  %s64_s16 = int_to_ptr.vmem [resolvable:$true] %s63_s16 }
   0x5   :  { %s2821_s19 = scalar_lea.hbm %s3592_s5, 32 }
   0x6   :  { %p2822_p0 = scmp.ne.s32.totalorder %s3592_s5, %s2821_s19  ;;  %p2825_p1 = scmp.lt.u32.totalorder %s2821_s19, %s3592_s5 }
   0x8   :  { %p2827_p2 = pnand %p2825_p1, %p2822_p0 }
   0xa   :  { %2830 = shalt.err (!%p2827_p2)
}
   0xb   :  { %s2831_s24 = scalar_lea.vmem %s44_s14, 32  ;;  %p2836_p4 = scmp.lt.s32.totalorder %s44_s14, %s44_s14 }
   0xc   :  { %p2832_p3 = scmp.ne.s32.totalorder %s44_s14, %s2831_s24  ;;  %p2837_p5 = scmp.lt.s32.totalorder %s2831_s24, %s2831_s24 }
   0xe   :  { %p2838_p6 = por %p2837_p5, %p2836_p4 }
  0x10   :  { %p2839_p7 = pnand %p2838_p6, %p2832_p3 }
  0x12   :  { %2842 = shalt.err (!%p2839_p7)
}
  0x13   :  { %46 = dma.hbm_to_vmem [thread:$0]  %s3592_s5, 32, %s44_s14, [#allocation6]  }
  0x14   :  { %s2843_s29 = scalar_lea.hbm %s3594_s7, 16 }
  0x15   :  { %p2844_p8 = scmp.ne.s32.totalorder %s3594_s7, %s2843_s29  ;;  %p2847_p9 = scmp.lt.u32.totalorder %s2843_s29, %s3594_s7 }
  0x17   :  { %p2849_p10 = pnand %p2847_p9, %p2844_p8 }
  0x19   :  { %2852 = shalt.err (!%p2849_p10)
}
  0x1a   :  { %s2853_s15 = scalar_lea.vmem %s64_s16, 16  ;;  %s2857_s17 = scalar_lea.vmem %s64_s16, 32 }
  0x1b   :  { %p2854_p11 = scmp.ne.s32.totalorder %s64_s16, %s2853_s15  ;;  %p2858_p12 = scmp.lt.s32.totalorder %s64_s16, %s64_s16 }
  0x1c   :  { %p2859_p13 = scmp.lt.s32.totalorder %s2857_s17, %s2853_s15 }
  0x1e   :  { %p2860_p0 = por %p2859_p13, %p2858_p12 }
  0x20   :  { %p2861_p1 = pnand %p2860_p0, %p2854_p11 }
  0x22   :  { %2864 = shalt.err (!%p2861_p1)
}
  0x23   :  { %66 = dma.hbm_to_vmem [thread:$0]  %s3594_s7, 16, %s64_s16, [#allocation9]  }
  0x24   :  { %s2963_s18 = smov [#allocation2]   ;;  %s2964_s20 = smov [#allocation7]  }
  0x25   :  { %s29_s19 = sshll.u32 %s2963_s18, 4  ;;  %s53_s21 = sshll.u32 %s2964_s20, 4  ;;  %s30_s19 = int_to_ptr.vmem [resolvable:$true] %s29_s19  ;;  %s54_s21 = int_to_ptr.vmem [resolvable:$true] %s53_s21 }
  0x26   :  { %s2865_s24 = scalar_lea.hbm %s3589_s2, 32 }
  0x27   :  { %p2866_p2 = scmp.ne.s32.totalorder %s3589_s2, %s2865_s24  ;;  %p2869_p3 = scmp.lt.u32.totalorder %s2865_s24, %s3589_s2 }
  0x29   :  { %p2871_p4 = pnand %p2869_p3, %p2866_p2 }
  0x2b   :  { %2874 = shalt.err (!%p2871_p4)
}
  0x2c   :  { %s2875_s7 = scalar_lea.vmem %s30_s19, 32  ;;  %p2880_p6 = scmp.lt.s32.totalorder %s30_s19, %s30_s19 }
  0x2d   :  { %p2876_p5 = scmp.ne.s32.totalorder %s30_s19, %s2875_s7  ;;  %p2881_p7 = scmp.lt.s32.totalorder %s2875_s7, %s2875_s7 }
  0x2f   :  { %p2882_p8 = por %p2881_p7, %p2880_p6 }
  0x31   :  { %p2883_p9 = pnand %p2882_p8, %p2876_p5 }
  0x33   :  { %2886 = shalt.err (!%p2883_p9)
}
  0x34   :  { %32 = dma.hbm_to_vmem [thread:$0]  %s3589_s2, 32, %s30_s19, [#allocation3]  }
  0x35   :  { %s2887_s12 = scalar_lea.hbm %s3593_s6, 16 }
  0x36   :  { %p2888_p10 = scmp.ne.s32.totalorder %s3593_s6, %s2887_s12  ;;  %p2891_p11 = scmp.lt.u32.totalorder %s2887_s12, %s3593_s6 }
  0x38   :  { %p2893_p12 = pnand %p2891_p11, %p2888_p10 }
  0x3a   :  { %2896 = shalt.err (!%p2893_p12)
}
  0x3b   :  { %s2897_s14 = scalar_lea.vmem %s54_s21, 16  ;;  %s2901_s18 = scalar_lea.vmem %s54_s21, 32 }
  0x3c   :  { %p2898_p13 = scmp.ne.s32.totalorder %s54_s21, %s2897_s14  ;;  %p2902_p0 = scmp.lt.s32.totalorder %s54_s21, %s54_s21 }
  0x3d   :  { %p2903_p1 = scmp.lt.s32.totalorder %s2901_s18, %s2897_s14 }
  0x3f   :  { %p2904_p2 = por %p2903_p1, %p2902_p0 }
  0x41   :  { %p2905_p3 = pnand %p2904_p2, %p2898_p13 }
  0x43   :  { %2908 = shalt.err (!%p2905_p3)
}
  0x44   :  { %56 = dma.hbm_to_vmem [thread:$0]  %s3593_s6, 16, %s54_s21, [#allocation6]  }
  0x45   :  { %s2965_s20 = smov [#allocation10]   ;;  %s2909_s25 = scalar_lea.hbm %s3596_s9, 16 }
  0x46   :  { %s75_s22 = sshll.u32 %s2965_s20, 4  ;;  %p2910_p4 = scmp.ne.s32.totalorder %s3596_s9, %s2909_s25  ;;  %s76_s22 = int_to_ptr.vmem [resolvable:$true] %s75_s22 }
  0x47   :  { %p2913_p5 = scmp.lt.u32.totalorder %s2909_s25, %s3596_s9 }
  0x49   :  { %p2915_p6 = pnand %p2913_p5, %p2910_p4 }
  0x4b   :  { %2918 = shalt.err (!%p2915_p6)
}
  0x4c   :  { %s2919_s16 = scalar_lea.vmem %s76_s22, 16  ;;  %s2923_s6 = scalar_lea.vmem %s76_s22, 32 }
  0x4d   :  { %p2920_p7 = scmp.ne.s32.totalorder %s76_s22, %s2919_s16  ;;  %p2924_p8 = scmp.lt.s32.totalorder %s76_s22, %s76_s22 }
  0x4e   :  { %p2925_p9 = scmp.lt.s32.totalorder %s2923_s6, %s2919_s16 }
  0x50   :  { %p2926_p10 = por %p2925_p9, %p2924_p8 }
  0x52   :  { %p2927_p11 = pnand %p2926_p10, %p2920_p7 }
  0x54   :  { %2930 = shalt.err (!%p2927_p11)
}
  0x55   :  { %78 = dma.hbm_to_vmem [thread:$0]  %s3596_s9, 16, %s76_s22, [#allocation9]  }
  0x56   :  { %2953 = dma.done.wait [#allocation3], 32  }
  0x57   :  { %2954 = vsyncadd [#allocation3], 4294967264 }
  0x58   :  { %2955 = dma.done.wait [#allocation6], 48  }
  0x59   :  { %2956 = vsyncadd [#allocation6], 4294967248 }
  0x5a   :  { %2957 = dma.done.wait [#allocation9], 32  }
  0x5b   :  { %2958 = vsyncadd [#allocation9], 4294967264  ;;  %v2966_v0 = vmov 0   ;;  %v98_v1 = vlaneseq  ;;  %v2967_v2 = vmov 1983009808   ;;  %vm268_vm0 = vcmask 130048  }
  0x5c   :  { %304 = vmatprep.mubr.bf16.mxu1 %v2966_v0  ;;  %249 = vmatprep.mubr.bf16.mxu0 %v2966_v0  ;;  %v108_v3 = vunpack.c.l.s4 %v2967_v2  ;;  %v3098_v4 = vld [vmem:[%s3591_s4 + $0x4] ss:$8 sps:$4 sm:$0xff]   ;;  %v3104_v6 = vld [vmem:[%s3591_s4] ss:$8 sps:$4 sm:$0xff]   ;;  %v3110_v7 = vld [vmem:[%s3591_s4 + $0x14] ss:$8 sps:$4 sm:$0xff]  }
  0x5d   :  { %v99_v5 = vshrl.u32 %v98_v1, 7  ;;  %217 = vmatprep.subr.bf16.mxu0 %v3098_v4  ;;  %v3116_v8 = vld [vmem:[%s3591_s4 + $0x10] ss:$8 sps:$4 sm:$0xff]   ;;  %v3121_v9 = vld [vmem:[%s3591_s4 + $0x24] ss:$8 sps:$4 sm:$0xff]   ;;  %s2969_s21 = smov 112  }
  0x5e   :  { %218 = vmatpush1.bf16.msra.mxu0 %v3104_v6  ;;  %v109_v10 = vunpack.c.0.s8 %v108_v3  ;;  %v3127_v11 = vld [vmem:[%s3590_s3 + $0x4] ss:$8 sps:$4 sm:$0xff]   ;;  %v3132_v14 = vld [vmem:[%s3591_s4 + $0x20] ss:$8 sps:$4 sm:$0xff]   ;;  %v3138_v15 = vld [vmem:[%s3591_s4 + $0x34] ss:$8 sps:$4 sm:$0xff]  }
  0x5f   :  { %219 = vmatprep.subr.bf16.mxu0 %v3110_v7  ;;  %v100_v12 = vsub.s32 0, %v99_v5  ;;  %v104_v13 = vsub.s32 1, %v99_v5  ;;  %272 = vmatprep.subr.bf16.mxu1 %v3127_v11  ;;  %v3143_v16 = vld [vmem:[%s3590_s3] ss:$8 sps:$4 sm:$0xff]   ;;  %v3158_v27 = vld [vmem:[%s3591_s4 + $0x30] ss:$8 sps:$4 sm:$0xff]  }
  0x60   :  { %v96_v17 = vld [vmem:[%s3588_s1] sm:$0x3]  ;;  %v112_v18 = vsub.s32 %v109_v10, %v99_v5  ;;  %v159_v20 = vld [vmem:[#allocation5] sm:$0x3]  ;;  %273 = vmatpush1.bf16.msra.mxu1 %v3143_v16  ;;  %v161_v62 = vand.u32 127, %v98_v1  ;;  %vm213_vm2 = vcmask 523264  }
  0x61   :  { %v116_v19 = vld [vmem:[#allocation2] sm:$0x3]  ;;  %v101_v21 = vrot.slane %v96_v17, %v100_v12  ;;  %v105_v22 = vrot.slane %v96_v17, %v104_v13  ;;  %v3151_v25 = vrot.slane %v159_v20, %v100_v12  ;;  %356 = vmatprep.subr.bf16.mxu1 %v3098_v4  ;;  %v3193_v36 = vrot.slane %v159_v20, %v104_v13  ;;  %s2970_s29 = smov 96   ;;  %s2971_s30 = smov 80  }
  0x62   :  { %220 = vmatpush1.bf16.msra.mxu0 %v3116_v8  ;;  %v121_v23 = vrot.slane %v116_v19, %v100_v12  ;;  %v125_v24 = vrot.slane %v116_v19, %v104_v13  ;;  %v95_v28 = vld [vmem:[%s3587_s0] sm:$0xf]  ;;  %s2968_s0 = smov 64   ;;  %vm345_vm1 = vcmp.lt.s32.totalorder %v161_v62, 32  ;;  %s2972_s11 = smov 48   ;;  %vm2976_vm3 = vmmov 0  }
  0x63   :  { %221 = vmatprep.subr.bf16.mxu0 %v3121_v9  ;;  %v106_v26 = vcombine.low %v101_v21, %v105_v22  ;;  %s2973_s9 = smov 32   ;;  %s2974_s12 = smov 16   ;;  %vm2323_vm4 = vcmask 261120   ;;  %vm2367_vm5 = vcmask 58368  }
  0x64   :  { %v126_v29 = vcombine.low %v121_v23, %v125_v24 }
  0x65   :  { %v113_v30 = vrot.slane %v106_v26, %v112_v18 }
  0x66   :  { %222 = vmatpush1.bf16.msra.mxu0 %v3132_v14  ;;  %v133_v31 = vrot.slane %v126_v29, %v112_v18 }
  0x67   :  { %223 = vmatprep.subr.bf16.mxu0 %v3138_v15  ;;  %v115_v32 = vmul.f32 %v113_v30, %v95_v28 }
  0x69   :  { %v135_v33 = vadd.f32 %v133_v31, %v115_v32 }
  0x6a   :  { %224 = vmatpush1.bf16.msra.mxu0 %v3158_v27 }
  0x6b   :  { %484 = vmatprep.subr.bf16.mxu0 %v3098_v4  ;;  %v3166_v34 = vrot.slane %v135_v33, %v112_v18 }
  0x6d   :  { %250 = vmatmul.mubr.bf16.vlgmr.msra.gmra.mrb[0].mxu0 %v2966_v0  ;;  %v3173_v35 = vpack.c.bf16 %v3166_v34, %v3166_v34 }
  0x6e   :  { %485 = vmatpush1.bf16.msra.mxu0 %v3104_v6  ;;  %516 = vmatprep.mubr.bf16.mxu0 %v2966_v0 }
  0x6f   :  { %486 = vmatprep.subr.bf16.mxu0 %v3110_v7  ;;  %2396 = vmatmul.mubr.msk.bf16.vlgmr.msra.gmra.mrb[0].mxu1 %vm268_vm0, %v3173_v35 }
  0x70   :  { %357 = vmatpush1.bf16.msra.mxu1 %v3104_v6  ;;  %388 = vmatprep.mubr.bf16.mxu1 %v2966_v0 }
  0x71   :  { %358 = vmatprep.subr.bf16.mxu1 %v3110_v7 }
  0x72   :  { %487 = vmatpush1.bf16.msra.mxu0 %v3116_v8 }
  0x73   :  { %488 = vmatprep.subr.bf16.mxu0 %v3121_v9 }
  0x74   :  { %359 = vmatpush1.bf16.msra.mxu1 %v3116_v8 }
  0x75   :  { %360 = vmatprep.subr.bf16.mxu1 %v3121_v9 }
  0x76   :  { %489 = vmatpush1.bf16.msra.mxu0 %v3132_v14 }
  0x77   :  { %490 = vmatprep.subr.bf16.mxu0 %v3138_v15 }
  0x78   :  { %361 = vmatpush1.bf16.msra.mxu1 %v3132_v14 }
  0x79   :  { %362 = vmatprep.subr.bf16.mxu1 %v3138_v15 }
  0x7a   :  { %491 = vmatpush1.bf16.msra.mxu0 %v3158_v27 }
  0x7b   :  { %530 = vmatprep.subr.bf16.mxu0 %v3127_v11 }
  0x7c   :  { %363 = vmatpush1.bf16.msra.mxu1 %v3158_v27 }
  0x7d   :  { %403 = vmatprep.subr.bf16.mxu1 %v3127_v11 }
 0x140   :  { %v251_v37 = vpop.f32.mrb[0].mxu0 }
 0x141   :  { %v252_v38 = vadd.f32 %v251_v37, %v3151_v25  ;;  %v253_v39 = vpop.f32.mrb[1].mxu0 }
 0x142   :  { %v254_v40 = vadd.f32 %v253_v39, %v3193_v36  ;;  %v255_v41 = vpop.f32.mrb[2].mxu0  ;;  %v306_v43 = vpop.f32.mrb[0].mxu1 }
 0x143   :  { %v256_v42 = vpop.f32.mrb[3].mxu0  ;;  %v313_v44 = vadd.f32 %v306_v43, %v252_v38  ;;  %v308_v45 = vpop.f32.mrb[1].mxu1 }
 0x144   :  { %v314_v46 = vadd.f32 %v308_v45, %v254_v40  ;;  %v310_v47 = vpop.f32.mrb[2].mxu1 }
 0x145   :  { %v311_v48 = vpop.f32.mrb[3].mxu1  ;;  %v2397_v50 = vmul.f32 -1.442695, %v313_v44 }
 0x146   :  { %2607 = vtanh.f32 %v314_v46  ;;  %v2398_v60 = vmul.f32 -1.442695, %v314_v46 }
 0x147   :  { %2609 = vpow2.f32 %v2397_v50 }
 0x150   :  { %v2608_v49 = vpop.eup %2607 }
 0x151   :  { %330 = vrot.lane.b32.xlu0 %v2608_v49, %s2968_s0  ;;  %v2610_v51 = vpop.eup %2609 }
 0x152   :  { %v321_v52 = vadd.f32 1.0, %v2610_v51 }
 0x154   :  { %2611 = vrcp.f32 %v321_v52 }
 0x15e   :  { %v2612_v53 = vpop.eup %2611 }
 0x15f   :  { %v328_v56 = vmul.f32 0.0, %v2612_v53 }
 0x1c3   :  { %v331_v54 = vpop.permute.xlu0 %330 }
 0x1c4   :  { %v333_v55 = vmul.f32 %v2612_v53, %v331_v54 }
 0x1c6   :  { %335 = vrot.lane.b32.xlu0 %v333_v55, %s2968_s0 }
 0x238   :  { %v336_v57 = vpop.permute.xlu0 %335 }
 0x239   :  { %v338_v58 = vadd.f32 %v336_v57, %v328_v56 }
 0x23b   :  { %2613 = vtanh.f32 %v338_v58  ;;  %347 = vrot.lane.b32.xlu0 %v338_v58, %s2968_s0 }
 0x23c   :  { %2615 = vpow2.f32 %v2398_v60 }
 0x245   :  { %v2614_v59 = vpop.eup %2613 }
 0x246   :  { %341 = vrot.lane.b32.xlu1 %v2614_v59, %s2968_s0  ;;  %v2616_v61 = vpop.eup %2615 }
 0x247   :  { %v322_v63 = vadd.f32 1.0, %v2616_v61 }
 0x249   :  { %2617 = vrcp.f32 %v322_v63 }
 0x24a   :  { %398 = vrot.lane.b32.xlu1 %v3173_v35, %s2969_s21 }
 0x253   :  { %v2618_v5 = vpop.eup %2617 }
 0x2ad   :  { %v348_v2 = vpop.permute.xlu0 %347 }
 0x2ae   :  { %v350_v3 = vsel %vm345_vm1, %v348_v2, 0.0 }
 0x2af   :  { %460 = vrot.lane.b32.xlu0 %v350_v3, %s2968_s0 }
 0x2b8   :  { %v342_v10 = vpop.permute.xlu1 %341 }
 0x2b9   :  { %v344_v12 = vmul.f32 %v2618_v5, %v342_v10 }
 0x2bb   :  { %v351_v13 = vsel %vm345_vm1, %v344_v12, 0.0 }
 0x2bc   :  { %v352_v17 = vpack.c.bf16 %v351_v13, %v351_v13  ;;  %v399_v1 = vpop.permute.xlu1 %398 }
 0x2be   :  { %2399 = vmatmul.mubr.msk.bf16.vlgmr.msra.gmra.mrb[4].mxu1 %vm213_vm2, %v352_v17 }
 0x2bf   :  { %404 = vmatpush1.bf16.msra.mxu1 %v3143_v16  ;;  %435 = vmatprep.mubr.bf16.mxu1 %v2966_v0 }
 0x2c0   :  { %607 = vmatprep.subr.bf16.mxu1 %v3098_v4 }
 0x2ca   :  { %2400 = vmatmul.mubr.msk.bf16.vlgmr.msra.gmra.mrb[4].mxu1 %vm268_vm0, %v399_v1 }
 0x2cb   :  { %608 = vmatpush1.bf16.msra.mxu1 %v3104_v6  ;;  %639 = vmatprep.mubr.bf16.mxu1 %v2966_v0 }
 0x2cc   :  { %609 = vmatprep.subr.bf16.mxu1 %v3110_v7 }
 0x2cf   :  { %610 = vmatpush1.bf16.msra.mxu1 %v3116_v8 }
 0x2d0   :  { %611 = vmatprep.subr.bf16.mxu1 %v3121_v9 }
 0x2d3   :  { %612 = vmatpush1.bf16.msra.mxu1 %v3132_v14 }
 0x2d4   :  { %613 = vmatprep.subr.bf16.mxu1 %v3138_v15 }
 0x2d7   :  { %614 = vmatpush1.bf16.msra.mxu1 %v3158_v27 }
 0x2d8   :  { %653 = vmatprep.subr.bf16.mxu1 %v3127_v11 }
 0x321   :  { %v461_v33 = vpop.permute.xlu0 %460 }
 0x39d   :  { %v437_v18 = vpop.f32.mrb[4].mxu1 }
 0x39e   :  { %v439_v19 = vpop.f32.mrb[5].mxu1  ;;  %v2483_v24 = vadd.f32 %v437_v18, %v3151_v25 }
 0x39f   :  { %v2484_v20 = vadd.f32 %v439_v19, %v3193_v36  ;;  %v441_v21 = vpop.f32.mrb[6].mxu1 }
 0x3a0   :  { %v442_v22 = vpop.f32.mrb[7].mxu1  ;;  %v2401_v26 = vmul.f32 -1.442695, %v2483_v24 }
 0x3a1   :  { %2619 = vtanh.f32 %v2484_v20  ;;  %v2402_v41 = vmul.f32 -1.442695, %v2484_v20 }
 0x3a2   :  { %2621 = vpow2.f32 %v2401_v26 }
 0x3ab   :  { %v2620_v23 = vpop.eup %2619 }
 0x3ac   :  { %465 = vrot.lane.b32.xlu1 %v2620_v23, %s2968_s0  ;;  %v2622_v28 = vpop.eup %2621 }
 0x3ad   :  { %v452_v29 = vadd.f32 1.0, %v2622_v28 }
 0x3af   :  { %2623 = vrcp.f32 %v452_v29 }
 0x3b9   :  { %v2624_v30 = vpop.eup %2623 }
 0x3ba   :  { %v463_v37 = vmul.f32 %v2624_v30, %v461_v33 }
 0x41e   :  { %v466_v31 = vpop.permute.xlu1 %465 }
 0x41f   :  { %v468_v32 = vmul.f32 %v2624_v30, %v466_v31 }
 0x421   :  { %470 = vrot.lane.b32.xlu1 %v468_v32, %s2968_s0 }
 0x425   :  { %525 = vrot.lane.b32.xlu1 %v3173_v35, %s2970_s29 }
 0x493   :  { %v471_v38 = vpop.permute.xlu1 %470 }
 0x494   :  { %v473_v39 = vadd.f32 %v471_v38, %v463_v37 }
 0x496   :  { %2625 = vtanh.f32 %v473_v39 }
 0x497   :  { %2627 = vpow2.f32 %v2402_v41  ;;  %v526_v48 = vpop.permute.xlu1 %525 }
 0x4a0   :  { %v2626_v40 = vpop.eup %2625 }
 0x4a1   :  { %476 = vrot.lane.b32.xlu0 %v2626_v40, %s2968_s0  ;;  %v2628_v42 = vpop.eup %2627 }
 0x4a2   :  { %v453_v43 = vadd.f32 1.0, %v2628_v42 }
 0x4a4   :  { %2629 = vrcp.f32 %v453_v43 }
 0x4ae   :  { %v2630_v44 = vpop.eup %2629 }
 0x513   :  { %v477_v45 = vpop.permute.xlu0 %476 }
 0x514   :  { %v479_v46 = vmul.f32 %v2630_v44, %v477_v45 }
 0x516   :  { %v480_v47 = vpack.c.bf16 %v479_v46, %v479_v46 }
 0x518   :  { %2403 = vmatmul.mubr.msk.bf16.vlgmr.msra.gmra.mrb[4].mxu0 %vm213_vm2, %v480_v47 }
 0x519   :  { %531 = vmatpush1.bf16.msra.mxu0 %v3143_v16  ;;  %562 = vmatprep.mubr.bf16.mxu0 %v2966_v0 }
 0x51a   :  { %730 = vmatprep.subr.bf16.mxu0 %v3098_v4 }
 0x524   :  { %2404 = vmatmul.mubr.msk.bf16.vlgmr.msra.gmra.mrb[4].mxu0 %vm268_vm0, %v526_v48 }
 0x525   :  { %731 = vmatpush1.bf16.msra.mxu0 %v3104_v6  ;;  %762 = vmatprep.mubr.bf16.mxu0 %v2966_v0 }
 0x526   :  { %732 = vmatprep.subr.bf16.mxu0 %v3110_v7 }
 0x529   :  { %733 = vmatpush1.bf16.msra.mxu0 %v3116_v8 }
 0x52a   :  { %734 = vmatprep.subr.bf16.mxu0 %v3121_v9 }
 0x52d   :  { %735 = vmatpush1.bf16.msra.mxu0 %v3132_v14 }
 0x52e   :  { %736 = vmatprep.subr.bf16.mxu0 %v3138_v15 }
 0x531   :  { %737 = vmatpush1.bf16.msra.mxu0 %v3158_v27 }
 0x532   :  { %776 = vmatprep.subr.bf16.mxu0 %v3127_v11 }
 0x5f7   :  { %v564_v49 = vpop.f32.mrb[4].mxu0 }
 0x5f8   :  { %v566_v50 = vpop.f32.mrb[5].mxu0  ;;  %v2485_v55 = vadd.f32 %v564_v49, %v3151_v25 }
 0x5f9   :  { %v2486_v51 = vadd.f32 %v566_v50, %v3193_v36  ;;  %v568_v52 = vpop.f32.mrb[6].mxu0 }
 0x5fa   :  { %v569_v53 = vpop.f32.mrb[7].mxu0  ;;  %v2405_v56 = vmul.f32 -1.442695, %v2485_v55 }
 0x5fb   :  { %2631 = vtanh.f32 %v2486_v51  ;;  %v2406_v5 = vmul.f32 -1.442695, %v2486_v51 }
 0x5fc   :  { %2633 = vpow2.f32 %v2405_v56 }
 0x605   :  { %v2632_v54 = vpop.eup %2631 }
 0x606   :  { %588 = vrot.lane.b32.xlu0 %v2632_v54, %s2968_s0  ;;  %v2634_v57 = vpop.eup %2633 }
 0x607   :  { %v579_v58 = vadd.f32 1.0, %v2634_v57 }
 0x609   :  { %2635 = vrcp.f32 %v579_v58 }
 0x613   :  { %v2636_v59 = vpop.eup %2635 }
 0x614   :  { %v586_v62 = vmul.f32 %v2636_v59, %v473_v39 }
 0x678   :  { %v589_v60 = vpop.permute.xlu0 %588 }
 0x679   :  { %v591_v61 = vmul.f32 %v2636_v59, %v589_v60 }
 0x67b   :  { %593 = vrot.lane.b32.xlu1 %v591_v61, %s2968_s0 }
 0x67f   :  { %648 = vrot.lane.b32.xlu1 %v3173_v35, %s2971_s30 }
 0x6ed   :  { %v594_v63 = vpop.permute.xlu1 %593 }
 0x6ee   :  { %v596_v2 = vadd.f32 %v594_v63, %v586_v62 }
 0x6f0   :  { %2637 = vtanh.f32 %v596_v2 }
 0x6f1   :  { %2639 = vpow2.f32 %v2406_v5  ;;  %v649_v19 = vpop.permute.xlu1 %648 }
 0x6fa   :  { %v2638_v3 = vpop.eup %2637 }
 0x6fb   :  { %599 = vrot.lane.b32.xlu0 %v2638_v3, %s2968_s0  ;;  %v2640_v10 = vpop.eup %2639 }
 0x6fc   :  { %v580_v12 = vadd.f32 1.0, %v2640_v10 }
 0x6fe   :  { %2641 = vrcp.f32 %v580_v12 }
 0x708   :  { %v2642_v13 = vpop.eup %2641 }
 0x76d   :  { %v600_v17 = vpop.permute.xlu0 %599 }
 0x76e   :  { %v602_v1 = vmul.f32 %v2642_v13, %v600_v17 }
 0x770   :  { %v603_v18 = vpack.c.bf16 %v602_v1, %v602_v1 }
 0x772   :  { %2407 = vmatmul.mubr.msk.bf16.vlgmr.msra.gmra.mrb[8].mxu1 %vm213_vm2, %v603_v18 }
 0x773   :  { %654 = vmatpush1.bf16.msra.mxu1 %v3143_v16  ;;  %685 = vmatprep.mubr.bf16.mxu1 %v2966_v0 }
 0x774   :  { %853 = vmatprep.subr.bf16.mxu1 %v3098_v4 }
 0x77e   :  { %2408 = vmatmul.mubr.msk.bf16.vlgmr.msra.gmra.mrb[8].mxu1 %vm268_vm0, %v649_v19 }
 0x77f   :  { %854 = vmatpush1.bf16.msra.mxu1 %v3104_v6  ;;  %885 = vmatprep.mubr.bf16.mxu1 %v2966_v0 }
 0x780   :  { %855 = vmatprep.subr.bf16.mxu1 %v3110_v7 }
 0x783   :  { %856 = vmatpush1.bf16.msra.mxu1 %v3116_v8 }
 0x784   :  { %857 = vmatprep.subr.bf16.mxu1 %v3121_v9 }
 0x787   :  { %858 = vmatpush1.bf16.msra.mxu1 %v3132_v14 }
 0x788   :  { %859 = vmatprep.subr.bf16.mxu1 %v3138_v15 }
 0x78b   :  { %860 = vmatpush1.bf16.msra.mxu1 %v3158_v27 }
 0x78c   :  { %899 = vmatprep.subr.bf16.mxu1 %v3127_v11 }
 0x851   :  { %v687_v20 = vpop.f32.mrb[8].mxu1 }
 0x852   :  { %v689_v21 = vpop.f32.mrb[9].mxu1  ;;  %v2487_v28 = vadd.f32 %v687_v20, %v3151_v25 }
 0x853   :  { %v2488_v22 = vadd.f32 %v689_v21, %v3193_v36  ;;  %v691_v23 = vpop.f32.mrb[10].mxu1 }
 0x854   :  { %v692_v24 = vpop.f32.mrb[11].mxu1  ;;  %v2409_v29 = vmul.f32 -1.442695, %v2487_v28 }
 0x855   :  { %2643 = vtanh.f32 %v2488_v22  ;;  %v2410_v42 = vmul.f32 -1.442695, %v2488_v22 }
 0x856   :  { %2645 = vpow2.f32 %v2409_v29 }
 0x85f   :  { %v2644_v26 = vpop.eup %2643 }
 0x860   :  { %711 = vrot.lane.b32.xlu0 %v2644_v26, %s2968_s0  ;;  %v2646_v30 = vpop.eup %2645 }
 0x861   :  { %v702_v31 = vadd.f32 1.0, %v2646_v30 }
 0x863   :  { %2647 = vrcp.f32 %v702_v31 }
 0x86d   :  { %v2648_v32 = vpop.eup %2647 }
 0x86e   :  { %v709_v38 = vmul.f32 %v2648_v32, %v596_v2 }
 0x8d2   :  { %v712_v33 = vpop.permute.xlu0 %711 }
 0x8d3   :  { %v714_v37 = vmul.f32 %v2648_v32, %v712_v33 }
 0x8d5   :  { %716 = vrot.lane.b32.xlu1 %v714_v37, %s2968_s0 }
 0x8d9   :  { %771 = vrot.lane.b32.xlu1 %v3173_v35, %s2968_s0 }
 0x947   :  { %v717_v39 = vpop.permute.xlu1 %716 }
 0x948   :  { %v719_v40 = vadd.f32 %v717_v39, %v709_v38 }
 0x94a   :  { %2649 = vtanh.f32 %v719_v40 }
 0x94b   :  { %2651 = vpow2.f32 %v2410_v42  ;;  %v772_v49 = vpop.permute.xlu1 %771 }
 0x954   :  { %v2650_v41 = vpop.eup %2649 }
 0x955   :  { %722 = vrot.lane.b32.xlu0 %v2650_v41, %s2968_s0  ;;  %v2652_v43 = vpop.eup %2651 }
 0x956   :  { %v703_v44 = vadd.f32 1.0, %v2652_v43 }
 0x958   :  { %2653 = vrcp.f32 %v703_v44 }
 0x962   :  { %v2654_v45 = vpop.eup %2653 }
 0x9c7   :  { %v723_v46 = vpop.permute.xlu0 %722 }
 0x9c8   :  { %v725_v47 = vmul.f32 %v2654_v45, %v723_v46 }
 0x9ca   :  { %v726_v48 = vpack.c.bf16 %v725_v47, %v725_v47 }
 0x9cc   :  { %2411 = vmatmul.mubr.msk.bf16.vlgmr.msra.gmra.mrb[8].mxu0 %vm213_vm2, %v726_v48 }
 0x9cd   :  { %777 = vmatpush1.bf16.msra.mxu0 %v3143_v16  ;;  %808 = vmatprep.mubr.bf16.mxu0 %v2966_v0 }
 0x9ce   :  { %976 = vmatprep.subr.bf16.mxu0 %v3098_v4 }
 0x9d8   :  { %2412 = vmatmul.mubr.msk.bf16.vlgmr.msra.gmra.mrb[8].mxu0 %vm268_vm0, %v772_v49 }
 0x9d9   :  { %977 = vmatpush1.bf16.msra.mxu0 %v3104_v6  ;;  %1008 = vmatprep.mubr.bf16.mxu0 %v2966_v0 }
 0x9da   :  { %978 = vmatprep.subr.bf16.mxu0 %v3110_v7 }
 0x9dd   :  { %979 = vmatpush1.bf16.msra.mxu0 %v3116_v8 }
 0x9de   :  { %980 = vmatprep.subr.bf16.mxu0 %v3121_v9 }
 0x9e1   :  { %981 = vmatpush1.bf16.msra.mxu0 %v3132_v14 }
 0x9e2   :  { %982 = vmatprep.subr.bf16.mxu0 %v3138_v15 }
 0x9e5   :  { %983 = vmatpush1.bf16.msra.mxu0 %v3158_v27 }
 0x9e6   :  { %1022 = vmatprep.subr.bf16.mxu0 %v3127_v11 }
 0xaab   :  { %v810_v50 = vpop.f32.mrb[8].mxu0 }
 0xaac   :  { %v812_v51 = vpop.f32.mrb[9].mxu0  ;;  %v2489_v56 = vadd.f32 %v810_v50, %v3151_v25 }
 0xaad   :  { %v2490_v52 = vadd.f32 %v812_v51, %v3193_v36  ;;  %v814_v53 = vpop.f32.mrb[10].mxu0 }
 0xaae   :  { %v815_v54 = vpop.f32.mrb[11].mxu0  ;;  %v2413_v57 = vmul.f32 -1.442695, %v2489_v56 }
 0xaaf   :  { %2655 = vtanh.f32 %v2490_v52  ;;  %v2414_v10 = vmul.f32 -1.442695, %v2490_v52 }
 0xab0   :  { %2657 = vpow2.f32 %v2413_v57 }
 0xab9   :  { %v2656_v55 = vpop.eup %2655 }
 0xaba   :  { %834 = vrot.lane.b32.xlu0 %v2656_v55, %s2968_s0  ;;  %v2658_v58 = vpop.eup %2657 }
 0xabb   :  { %v825_v59 = vadd.f32 1.0, %v2658_v58 }
 0xabd   :  { %2659 = vrcp.f32 %v825_v59 }
 0xac7   :  { %v2660_v60 = vpop.eup %2659 }
 0xac8   :  { %v832_v63 = vmul.f32 %v2660_v60, %v719_v40 }
 0xb2c   :  { %v835_v61 = vpop.permute.xlu0 %834 }
 0xb2d   :  { %v837_v62 = vmul.f32 %v2660_v60, %v835_v61 }
 0xb2f   :  { %839 = vrot.lane.b32.xlu1 %v837_v62, %s2968_s0 }
 0xb33   :  { %894 = vrot.lane.b32.xlu1 %v3173_v35, %s2972_s11 }
 0xba1   :  { %v840_v2 = vpop.permute.xlu1 %839 }
 0xba2   :  { %v842_v3 = vadd.f32 %v840_v2, %v832_v63 }
 0xba4   :  { %2661 = vtanh.f32 %v842_v3 }
 0xba5   :  { %2663 = vpow2.f32 %v2414_v10  ;;  %v895_v20 = vpop.permute.xlu1 %894 }
 0xbae   :  { %v2662_v5 = vpop.eup %2661 }
 0xbaf   :  { %845 = vrot.lane.b32.xlu0 %v2662_v5, %s2968_s0  ;;  %v2664_v12 = vpop.eup %2663 }
 0xbb0   :  { %v826_v13 = vadd.f32 1.0, %v2664_v12 }
 0xbb2   :  { %2665 = vrcp.f32 %v826_v13 }
 0xbbc   :  { %v2666_v17 = vpop.eup %2665 }
 0xc21   :  { %v846_v1 = vpop.permute.xlu0 %845 }
 0xc22   :  { %v848_v18 = vmul.f32 %v2666_v17, %v846_v1 }
 0xc24   :  { %v849_v19 = vpack.c.bf16 %v848_v18, %v848_v18 }
 0xc26   :  { %2415 = vmatmul.mubr.msk.bf16.vlgmr.msra.gmra.mrb[12].mxu1 %vm213_vm2, %v849_v19 }
 0xc27   :  { %900 = vmatpush1.bf16.msra.mxu1 %v3143_v16  ;;  %931 = vmatprep.mubr.bf16.mxu1 %v2966_v0 }
 0xc28   :  { %1099 = vmatprep.subr.bf16.mxu1 %v3098_v4 }
 0xc32   :  { %2416 = vmatmul.mubr.msk.bf16.vlgmr.msra.gmra.mrb[12].mxu1 %vm268_vm0, %v895_v20 }
 0xc33   :  { %1100 = vmatpush1.bf16.msra.mxu1 %v3104_v6  ;;  %1131 = vmatprep.mubr.bf16.mxu1 %v2966_v0 }
 0xc34   :  { %1101 = vmatprep.subr.bf16.mxu1 %v3110_v7 }
 0xc37   :  { %1102 = vmatpush1.bf16.msra.mxu1 %v3116_v8 }
 0xc38   :  { %1103 = vmatprep.subr.bf16.mxu1 %v3121_v9 }
 0xc3b   :  { %1104 = vmatpush1.bf16.msra.mxu1 %v3132_v14 }
 0xc3c   :  { %1105 = vmatprep.subr.bf16.mxu1 %v3138_v15 }
 0xc3f   :  { %1106 = vmatpush1.bf16.msra.mxu1 %v3158_v27 }
 0xc40   :  { %1145 = vmatprep.subr.bf16.mxu1 %v3127_v11 }
 0xd05   :  { %v933_v21 = vpop.f32.mrb[12].mxu1 }
 0xd06   :  { %v935_v22 = vpop.f32.mrb[13].mxu1  ;;  %v2491_v29 = vadd.f32 %v933_v21, %v3151_v25 }
 0xd07   :  { %v2492_v23 = vadd.f32 %v935_v22, %v3193_v36  ;;  %v937_v24 = vpop.f32.mrb[14].mxu1 }
 0xd08   :  { %v938_v26 = vpop.f32.mrb[15].mxu1  ;;  %v2417_v30 = vmul.f32 -1.442695, %v2491_v29 }
 0xd09   :  { %2667 = vtanh.f32 %v2492_v23  ;;  %v2418_v43 = vmul.f32 -1.442695, %v2492_v23 }
 0xd0a   :  { %2669 = vpow2.f32 %v2417_v30 }
 0xd13   :  { %v2668_v28 = vpop.eup %2667 }
 0xd14   :  { %957 = vrot.lane.b32.xlu0 %v2668_v28, %s2968_s0  ;;  %v2670_v31 = vpop.eup %2669 }
 0xd15   :  { %v948_v32 = vadd.f32 1.0, %v2670_v31 }
 0xd17   :  { %2671 = vrcp.f32 %v948_v32 }
 0xd21   :  { %v2672_v33 = vpop.eup %2671 }
 0xd22   :  { %v955_v39 = vmul.f32 %v2672_v33, %v842_v3 }
 0xd86   :  { %v958_v37 = vpop.permute.xlu0 %957 }
 0xd87   :  { %v960_v38 = vmul.f32 %v2672_v33, %v958_v37 }
 0xd89   :  { %962 = vrot.lane.b32.xlu1 %v960_v38, %s2968_s0 }
 0xd8d   :  { %1017 = vrot.lane.b32.xlu1 %v3173_v35, %s2973_s9 }
 0xdfb   :  { %v963_v40 = vpop.permute.xlu1 %962 }
 0xdfc   :  { %v965_v41 = vadd.f32 %v963_v40, %v955_v39 }
 0xdfe   :  { %2673 = vtanh.f32 %v965_v41 }
 0xdff   :  { %2675 = vpow2.f32 %v2418_v43  ;;  %v1018_v50 = vpop.permute.xlu1 %1017 }
 0xe08   :  { %v2674_v42 = vpop.eup %2673 }
 0xe09   :  { %968 = vrot.lane.b32.xlu0 %v2674_v42, %s2968_s0  ;;  %v2676_v44 = vpop.eup %2675 }
 0xe0a   :  { %v949_v45 = vadd.f32 1.0, %v2676_v44 }
 0xe0c   :  { %2677 = vrcp.f32 %v949_v45 }
 0xe16   :  { %v2678_v46 = vpop.eup %2677 }
 0xe7b   :  { %v969_v47 = vpop.permute.xlu0 %968 }
 0xe7c   :  { %v971_v48 = vmul.f32 %v2678_v46, %v969_v47 }
 0xe7e   :  { %v972_v49 = vpack.c.bf16 %v971_v48, %v971_v48 }
 0xe80   :  { %2419 = vmatmul.mubr.msk.bf16.vlgmr.msra.gmra.mrb[12].mxu0 %vm213_vm2, %v972_v49 }
 0xe81   :  { %1023 = vmatpush1.bf16.msra.mxu0 %v3143_v16  ;;  %1054 = vmatprep.mubr.bf16.mxu0 %v2966_v0 }
 0xe82   :  { %1222 = vmatprep.subr.bf16.mxu0 %v3098_v4 }
 0xe8c   :  { %2420 = vmatmul.mubr.msk.bf16.vlgmr.msra.gmra.mrb[12].mxu0 %vm268_vm0, %v1018_v50  ;;  %v144_v50 = vcombine.high %v3166_v34, %v3166_v34 }
 0xe8d   :  { %1223 = vmatpush1.bf16.msra.mxu0 %v3104_v6  ;;  %1254 = vmatprep.mubr.bf16.mxu0 %v2966_v0 }
 0xe8e   :  { %1224 = vmatprep.subr.bf16.mxu0 %v3110_v7 }
 0xe91   :  { %1225 = vmatpush1.bf16.msra.mxu0 %v3116_v8 }
 0xe92   :  { %1226 = vmatprep.subr.bf16.mxu0 %v3121_v9 }
 0xe95   :  { %1227 = vmatpush1.bf16.msra.mxu0 %v3132_v14 }
 0xe96   :  { %1228 = vmatprep.subr.bf16.mxu0 %v3138_v15 }
 0xe99   :  { %1229 = vmatpush1.bf16.msra.mxu0 %v3158_v27 }
 0xe9a   :  { %1266 = vmatprep.subr.bf16.mxu0 %v3127_v11 }
 0xf5f   :  { %v1056_v51 = vpop.f32.mrb[12].mxu0 }
 0xf60   :  { %v1058_v52 = vpop.f32.mrb[13].mxu0  ;;  %v2493_v57 = vadd.f32 %v1056_v51, %v3151_v25  ;;  %v3356_v51 = vpack.c.bf16 %v144_v50, %v144_v50  ;;  %v3457_v50 = vld [vmem:[%s3591_s4 + $0x30] ss:$8 sps:$4 sm:$0xff]  }
 0xf61   :  { %v2494_v53 = vadd.f32 %v1058_v52, %v3193_v36  ;;  %v1060_v54 = vpop.f32.mrb[14].mxu0 }
 0xf62   :  { %v1061_v55 = vpop.f32.mrb[15].mxu0  ;;  %v2421_v58 = vmul.f32 -1.442695, %v2493_v57 }
 0xf63   :  { %2679 = vtanh.f32 %v2494_v53  ;;  %v2422_v12 = vmul.f32 -1.442695, %v2494_v53 }
 0xf64   :  { %2681 = vpow2.f32 %v2421_v58 }
 0xf6d   :  { %v2680_v56 = vpop.eup %2679 }
 0xf6e   :  { %1080 = vrot.lane.b32.xlu0 %v2680_v56, %s2968_s0  ;;  %v2682_v59 = vpop.eup %2681 }
 0xf6f   :  { %v1071_v60 = vadd.f32 1.0, %v2682_v59 }
 0xf71   :  { %2683 = vrcp.f32 %v1071_v60 }
 0xf7b   :  { %v2684_v61 = vpop.eup %2683 }
 0xf7c   :  { %v1078_v2 = vmul.f32 %v2684_v61, %v965_v41 }
 0xfe0   :  { %v1081_v62 = vpop.permute.xlu0 %1080 }
 0xfe1   :  { %v1083_v63 = vmul.f32 %v2684_v61, %v1081_v62 }
 0xfe3   :  { %1085 = vrot.lane.b32.xlu1 %v1083_v63, %s2968_s0 }
 0xfe7   :  { %1140 = vrot.lane.b32.xlu1 %v3173_v35, %s2974_s12 }
0x1055   :  { %v1086_v3 = vpop.permute.xlu1 %1085 }
0x1056   :  { %v1088_v5 = vadd.f32 %v1086_v3, %v1078_v2 }
0x1058   :  { %2685 = vtanh.f32 %v1088_v5 }
0x1059   :  { %2687 = vpow2.f32 %v2422_v12  ;;  %v1141_v35 = vpop.permute.xlu1 %1140 }
0x1062   :  { %v2686_v10 = vpop.eup %2685 }
0x1063   :  { %1091 = vrot.lane.b32.xlu0 %v2686_v10, %s2968_s0  ;;  %v2688_v13 = vpop.eup %2687  ;;  %v3382_v10 = vld [vmem:[%s3591_s4 + $0x4] ss:$8 sps:$4 sm:$0xff]  }
0x1064   :  { %v1072_v17 = vadd.f32 1.0, %v2688_v13  ;;  %v3389_v13 = vld [vmem:[%s3591_s4] ss:$8 sps:$4 sm:$0xff]  }
0x1066   :  { %2689 = vrcp.f32 %v1072_v17  ;;  %v3402_v17 = vld [vmem:[%s3591_s4 + $0x10] ss:$8 sps:$4 sm:$0xff]  }
0x1070   :  { %v2690_v1 = vpop.eup %2689 }
0x10d5   :  { %v1092_v18 = vpop.permute.xlu0 %1091 }
0x10d6   :  { %v1094_v19 = vmul.f32 %v2690_v1, %v1092_v18  ;;  %v3408_v1 = vld [vmem:[%s3591_s4 + $0x24] ss:$8 sps:$4 sm:$0xff]   ;;  %v3414_v18 = vld [vmem:[%s3591_s4 + $0x20] ss:$8 sps:$4 sm:$0xff]  }
0x10d8   :  { %v1095_v20 = vpack.c.bf16 %v1094_v19, %v1094_v19  ;;  %v3420_v19 = vld [vmem:[%s3591_s4 + $0x34] ss:$8 sps:$4 sm:$0xff]  }
0x10da   :  { %2423 = vmatmul.mubr.msk.bf16.vlgmr.msra.gmra.mrb[16].mxu1 %vm213_vm2, %v1095_v20  ;;  %v3427_v20 = vld [vmem:[%s3590_s3 + $0x4] ss:$8 sps:$4 sm:$0xff]  }
0x10db   :  { %1146 = vmatpush1.bf16.msra.mxu1 %v3143_v16  ;;  %1177 = vmatprep.mubr.bf16.mxu1 %v2966_v0 }
0x10dc   :  { %1343 = vmatprep.subr.bf16.mxu1 %v3098_v4 }
0x10e6   :  { %2424 = vmatmul.mubr.msk.bf16.vlgmr.msra.gmra.mrb[16].mxu1 %vm268_vm0, %v1141_v35 }
0x10e7   :  { %1344 = vmatpush1.bf16.msra.mxu1 %v3104_v6  ;;  %1375 = vmatprep.mubr.bf16.mxu1 %v2966_v0 }
0x10e8   :  { %1345 = vmatprep.subr.bf16.mxu1 %v3110_v7 }
0x10eb   :  { %1346 = vmatpush1.bf16.msra.mxu1 %v3116_v8 }
0x10ec   :  { %1347 = vmatprep.subr.bf16.mxu1 %v3121_v9 }
0x10ef   :  { %1348 = vmatpush1.bf16.msra.mxu1 %v3132_v14 }
0x10f0   :  { %1349 = vmatprep.subr.bf16.mxu1 %v3138_v15 }
0x10f3   :  { %1350 = vmatpush1.bf16.msra.mxu1 %v3158_v27 }
0x10f4   :  { %1390 = vmatprep.subr.bf16.mxu1 %v3127_v11 }
0x11b9   :  { %v1179_v21 = vpop.f32.mrb[16].mxu1 }
0x11ba   :  { %v1181_v22 = vpop.f32.mrb[17].mxu1  ;;  %v2495_v29 = vadd.f32 %v1179_v21, %v3151_v25 }
0x11bb   :  { %v2496_v23 = vadd.f32 %v1181_v22, %v3193_v36  ;;  %v1183_v24 = vpop.f32.mrb[18].mxu1 }
0x11bc   :  { %v1184_v26 = vpop.f32.mrb[19].mxu1  ;;  %v2425_v30 = vmul.f32 -1.442695, %v2495_v29 }
0x11bd   :  { %2691 = vtanh.f32 %v2496_v23  ;;  %v2426_v43 = vmul.f32 -1.442695, %v2496_v23 }
0x11be   :  { %2693 = vpow2.f32 %v2425_v30 }
0x11c7   :  { %v2692_v28 = vpop.eup %2691 }
0x11c8   :  { %1203 = vrot.lane.b32.xlu0 %v2692_v28, %s2968_s0  ;;  %v2694_v31 = vpop.eup %2693 }
0x11c9   :  { %v1194_v32 = vadd.f32 1.0, %v2694_v31 }
0x11cb   :  { %2695 = vrcp.f32 %v1194_v32 }
0x11d5   :  { %v2696_v33 = vpop.eup %2695 }
0x11d6   :  { %v1201_v39 = vmul.f32 %v2696_v33, %v1088_v5 }
0x123a   :  { %v1204_v37 = vpop.permute.xlu0 %1203 }
0x123b   :  { %v1206_v38 = vmul.f32 %v2696_v33, %v1204_v37 }
0x123d   :  { %1208 = vrot.lane.b32.xlu1 %v1206_v38, %s2968_s0 }
0x12af   :  { %v1209_v40 = vpop.permute.xlu1 %1208 }
0x12b0   :  { %v1211_v41 = vadd.f32 %v1209_v40, %v1201_v39 }
0x12b2   :  { %2697 = vtanh.f32 %v1211_v41 }
0x12b3   :  { %2699 = vpow2.f32 %v2426_v43 }
0x12bc   :  { %v2698_v42 = vpop.eup %2697 }
0x12bd   :  { %1214 = vrot.lane.b32.xlu0 %v2698_v42, %s2968_s0  ;;  %v2700_v44 = vpop.eup %2699 }
0x12be   :  { %v1195_v45 = vadd.f32 1.0, %v2700_v44 }
0x12c0   :  { %2701 = vrcp.f32 %v1195_v45 }
0x12ca   :  { %v2702_v46 = vpop.eup %2701 }
0x132f   :  { %v1215_v47 = vpop.permute.xlu0 %1214 }
0x1330   :  { %v1217_v48 = vmul.f32 %v2702_v46, %v1215_v47 }
0x1332   :  { %v1218_v49 = vpack.c.bf16 %v1217_v48, %v1217_v48  ;;  %v3441_v48 = vld [vmem:[%s3590_s3] ss:$8 sps:$4 sm:$0xff]  }
0x1334   :  { %2427 = vmatmul.mubr.msk.bf16.vlgmr.msra.gmra.mrb[16].mxu0 %vm213_vm2, %v1218_v49 }
0x1335   :  { %1267 = vmatpush1.bf16.msra.mxu0 %v3143_v16  ;;  %1298 = vmatprep.mubr.bf16.mxu0 %v2966_v0 }
0x1336   :  { %1467 = vmatprep.subr.bf16.mxu0 %v3098_v4 }
0x1340   :  { %2428 = vmatmul.mubr.msk.bf16.vlgmr.msra.gmra.mrb[16].mxu0 %vm268_vm0, %v3356_v51 }
0x1341   :  { %1468 = vmatpush1.bf16.msra.mxu0 %v3104_v6  ;;  %1499 = vmatprep.mubr.bf16.mxu0 %v2966_v0 }
0x1342   :  { %1469 = vmatprep.subr.bf16.mxu0 %v3110_v7 }
0x1345   :  { %1470 = vmatpush1.bf16.msra.mxu0 %v3116_v8 }
0x1346   :  { %1471 = vmatprep.subr.bf16.mxu0 %v3121_v9 }
0x1349   :  { %1472 = vmatpush1.bf16.msra.mxu0 %v3132_v14 }
0x134a   :  { %1473 = vmatprep.subr.bf16.mxu0 %v3138_v15 }
0x134d   :  { %1474 = vmatpush1.bf16.msra.mxu0 %v3158_v27 }
0x134e   :  { %1513 = vmatprep.subr.bf16.mxu0 %v3127_v11 }
0x1413   :  { %v1300_v4 = vpop.f32.mrb[16].mxu0 }
0x1414   :  { %v1302_v34 = vpop.f32.mrb[17].mxu0  ;;  %v2497_v8 = vadd.f32 %v1300_v4, %v3151_v25 }
0x1415   :  { %v2498_v6 = vadd.f32 %v1302_v34, %v3193_v36  ;;  %v1304_v52 = vpop.f32.mrb[18].mxu0 }
0x1416   :  { %v1305_v53 = vpop.f32.mrb[19].mxu0  ;;  %v2429_v9 = vmul.f32 -1.442695, %v2497_v8 }
0x1417   :  { %2703 = vtanh.f32 %v2498_v6  ;;  %v2430_v60 = vmul.f32 -1.442695, %v2498_v6 }
0x1418   :  { %2705 = vpow2.f32 %v2429_v9 }
0x1421   :  { %v2704_v7 = vpop.eup %2703 }
0x1422   :  { %1324 = vrot.lane.b32.xlu1 %v2704_v7, %s2968_s0  ;;  %v2706_v14 = vpop.eup %2705 }
0x1423   :  { %v1315_v15 = vadd.f32 1.0, %v2706_v14 }
0x1425   :  { %2707 = vrcp.f32 %v1315_v15 }
0x142f   :  { %v2708_v54 = vpop.eup %2707 }
0x1430   :  { %v1322_v56 = vmul.f32 %v2708_v54, %v1211_v41 }
0x1494   :  { %v1325_v55 = vpop.permute.xlu1 %1324 }
0x1495   :  { %v1327_v11 = vmul.f32 %v2708_v54, %v1325_v55 }
0x1497   :  { %1329 = vrot.lane.b32.xlu0 %v1327_v11, %s2968_s0 }
0x149b   :  { %1385 = vrot.lane.b32.xlu0 %v3356_v51, %s2969_s21 }
0x1509   :  { %v1330_v57 = vpop.permute.xlu0 %1329 }
0x150a   :  { %v1332_v58 = vadd.f32 %v1330_v57, %v1322_v56 }
0x150c   :  { %2709 = vtanh.f32 %v1332_v58 }
0x150d   :  { %2711 = vpow2.f32 %v2430_v60  ;;  %v1386_v12 = vpop.permute.xlu0 %1385 }
0x1516   :  { %v2710_v59 = vpop.eup %2709 }
0x1517   :  { %1335 = vrot.lane.b32.xlu1 %v2710_v59, %s2968_s0  ;;  %v2712_v61 = vpop.eup %2711 }
0x1518   :  { %v1316_v62 = vadd.f32 1.0, %v2712_v61 }
0x151a   :  { %2713 = vrcp.f32 %v1316_v62 }
0x1524   :  { %v2714_v63 = vpop.eup %2713 }
0x1589   :  { %v1336_v2 = vpop.permute.xlu1 %1335 }
0x158a   :  { %v1338_v3 = vmul.f32 %v2714_v63, %v1336_v2 }
0x158c   :  { %v1339_v5 = vpack.c.bf16 %v1338_v3, %v1338_v3 }
0x158e   :  { %2431 = vmatmul.mubr.msk.bf16.vlgmr.msra.gmra.mrb[20].mxu1 %vm213_vm2, %v1339_v5 }
0x158f   :  { %1391 = vmatpush1.bf16.msra.mxu1 %v3143_v16  ;;  %1422 = vmatprep.mubr.bf16.mxu1 %v2966_v0  ;;  %v3396_v16 = vld [vmem:[%s3591_s4 + $0x14] ss:$8 sps:$4 sm:$0xff]  }
0x1590   :  { %1590 = vmatprep.subr.bf16.mxu1 %v3382_v10 }
0x159a   :  { %2432 = vmatmul.mubr.msk.bf16.vlgmr.msra.gmra.mrb[20].mxu1 %vm268_vm0, %v1386_v12 }
0x159b   :  { %1591 = vmatpush1.bf16.msra.mxu1 %v3389_v13  ;;  %1622 = vmatprep.mubr.bf16.mxu1 %v2966_v0 }
0x159c   :  { %1592 = vmatprep.subr.bf16.mxu1 %v3396_v16 }
0x159f   :  { %1593 = vmatpush1.bf16.msra.mxu1 %v3402_v17 }
0x15a0   :  { %1594 = vmatprep.subr.bf16.mxu1 %v3408_v1 }
0x15a3   :  { %1595 = vmatpush1.bf16.msra.mxu1 %v3414_v18 }
0x15a4   :  { %1596 = vmatprep.subr.bf16.mxu1 %v3420_v19 }
0x15a7   :  { %1597 = vmatpush1.bf16.msra.mxu1 %v3158_v27 }
0x15a8   :  { %1636 = vmatprep.subr.bf16.mxu1 %v3427_v20 }
0x166d   :  { %v1424_v35 = vpop.f32.mrb[20].mxu1 }
0x166e   :  { %v1426_v21 = vpop.f32.mrb[21].mxu1  ;;  %v2499_v28 = vadd.f32 %v1424_v35, %v3151_v25 }
0x166f   :  { %v2500_v22 = vadd.f32 %v1426_v21, %v3193_v36  ;;  %v1428_v23 = vpop.f32.mrb[22].mxu1 }
0x1670   :  { %v1429_v24 = vpop.f32.mrb[23].mxu1  ;;  %v2433_v27 = vmul.f32 -1.442695, %v2499_v28 }
0x1671   :  { %2715 = vtanh.f32 %v2500_v22  ;;  %v2434_v41 = vmul.f32 -1.442695, %v2500_v22 }
0x1672   :  { %2717 = vpow2.f32 %v2433_v27 }
0x167b   :  { %v2716_v26 = vpop.eup %2715 }
0x167c   :  { %1448 = vrot.lane.b32.xlu1 %v2716_v26, %s2968_s0  ;;  %v2718_v29 = vpop.eup %2717 }
0x167d   :  { %v1439_v30 = vadd.f32 1.0, %v2718_v29 }
0x167f   :  { %2719 = vrcp.f32 %v1439_v30 }
0x1689   :  { %v2720_v31 = vpop.eup %2719 }
0x168a   :  { %v1446_v37 = vmul.f32 %v2720_v31, %v1332_v58 }
0x16ee   :  { %v1449_v32 = vpop.permute.xlu1 %1448 }
0x16ef   :  { %v1451_v33 = vmul.f32 %v2720_v31, %v1449_v32 }
0x16f1   :  { %1453 = vrot.lane.b32.xlu0 %v1451_v33, %s2968_s0 }
0x16f5   :  { %1508 = vrot.lane.b32.xlu0 %v3356_v51, %s2970_s29 }
0x1763   :  { %v1454_v38 = vpop.permute.xlu0 %1453 }
0x1764   :  { %v1456_v39 = vadd.f32 %v1454_v38, %v1446_v37 }
0x1766   :  { %2721 = vtanh.f32 %v1456_v39 }
0x1767   :  { %2723 = vpow2.f32 %v2434_v41  ;;  %v1509_v49 = vpop.permute.xlu0 %1508 }
0x1770   :  { %v2722_v40 = vpop.eup %2721 }
0x1771   :  { %1459 = vrot.lane.b32.xlu1 %v2722_v40, %s2968_s0  ;;  %v2724_v42 = vpop.eup %2723 }
0x1772   :  { %v1440_v43 = vadd.f32 1.0, %v2724_v42 }
0x1774   :  { %2725 = vrcp.f32 %v1440_v43 }
0x177e   :  { %v2726_v44 = vpop.eup %2725 }
0x17e3   :  { %v1460_v45 = vpop.permute.xlu1 %1459 }
0x17e4   :  { %v1462_v46 = vmul.f32 %v2726_v44, %v1460_v45 }
0x17e6   :  { %v1463_v47 = vpack.c.bf16 %v1462_v46, %v1462_v46 }
0x17e8   :  { %2435 = vmatmul.mubr.msk.bf16.vlgmr.msra.gmra.mrb[20].mxu0 %vm213_vm2, %v1463_v47 }
0x17e9   :  { %1514 = vmatpush1.bf16.msra.mxu0 %v3441_v48  ;;  %1545 = vmatprep.mubr.bf16.mxu0 %v2966_v0 }
0x17ea   :  { %1713 = vmatprep.subr.bf16.mxu0 %v3382_v10 }
0x17f4   :  { %2436 = vmatmul.mubr.msk.bf16.vlgmr.msra.gmra.mrb[20].mxu0 %vm268_vm0, %v1509_v49 }
0x17f5   :  { %1714 = vmatpush1.bf16.msra.mxu0 %v3389_v13  ;;  %1745 = vmatprep.mubr.bf16.mxu0 %v2966_v0 }
0x17f6   :  { %1715 = vmatprep.subr.bf16.mxu0 %v3396_v16 }
0x17f9   :  { %1716 = vmatpush1.bf16.msra.mxu0 %v3402_v17 }
0x17fa   :  { %1717 = vmatprep.subr.bf16.mxu0 %v3408_v1 }
0x17fd   :  { %1718 = vmatpush1.bf16.msra.mxu0 %v3414_v18 }
0x17fe   :  { %1719 = vmatprep.subr.bf16.mxu0 %v3420_v19 }
0x1801   :  { %1720 = vmatpush1.bf16.msra.mxu0 %v3457_v50 }
0x1802   :  { %1759 = vmatprep.subr.bf16.mxu0 %v3427_v20 }
0x18c7   :  { %v1547_v4 = vpop.f32.mrb[20].mxu0 }
0x18c8   :  { %v1549_v34 = vpop.f32.mrb[21].mxu0  ;;  %v2501_v8 = vadd.f32 %v1547_v4, %v3151_v25 }
0x18c9   :  { %v2502_v6 = vadd.f32 %v1549_v34, %v3193_v36  ;;  %v1551_v52 = vpop.f32.mrb[22].mxu0 }
0x18ca   :  { %v1552_v53 = vpop.f32.mrb[23].mxu0  ;;  %v2437_v9 = vmul.f32 -1.442695, %v2501_v8 }
0x18cb   :  { %2727 = vtanh.f32 %v2502_v6  ;;  %v2438_v60 = vmul.f32 -1.442695, %v2502_v6 }
0x18cc   :  { %2729 = vpow2.f32 %v2437_v9 }
0x18d5   :  { %v2728_v7 = vpop.eup %2727 }
0x18d6   :  { %1571 = vrot.lane.b32.xlu1 %v2728_v7, %s2968_s0  ;;  %v2730_v14 = vpop.eup %2729 }
0x18d7   :  { %v1562_v15 = vadd.f32 1.0, %v2730_v14 }
0x18d9   :  { %2731 = vrcp.f32 %v1562_v15 }
0x18e3   :  { %v2732_v54 = vpop.eup %2731 }
0x18e4   :  { %v1569_v56 = vmul.f32 %v2732_v54, %v1456_v39 }
0x1948   :  { %v1572_v55 = vpop.permute.xlu1 %1571 }
0x1949   :  { %v1574_v11 = vmul.f32 %v2732_v54, %v1572_v55 }
0x194b   :  { %1576 = vrot.lane.b32.xlu0 %v1574_v11, %s2968_s0 }
0x194f   :  { %1631 = vrot.lane.b32.xlu0 %v3356_v51, %s2971_s30 }
0x19bd   :  { %v1577_v57 = vpop.permute.xlu0 %1576 }
0x19be   :  { %v1579_v58 = vadd.f32 %v1577_v57, %v1569_v56 }
0x19c0   :  { %2733 = vtanh.f32 %v1579_v58 }
0x19c1   :  { %2735 = vpow2.f32 %v2438_v60  ;;  %v1632_v12 = vpop.permute.xlu0 %1631 }
0x19ca   :  { %v2734_v59 = vpop.eup %2733 }
0x19cb   :  { %1582 = vrot.lane.b32.xlu1 %v2734_v59, %s2968_s0  ;;  %v2736_v61 = vpop.eup %2735 }
0x19cc   :  { %v1563_v62 = vadd.f32 1.0, %v2736_v61 }
0x19ce   :  { %2737 = vrcp.f32 %v1563_v62 }
0x19d8   :  { %v2738_v63 = vpop.eup %2737 }
0x1a3d   :  { %v1583_v2 = vpop.permute.xlu1 %1582 }
0x1a3e   :  { %v1585_v3 = vmul.f32 %v2738_v63, %v1583_v2 }
0x1a40   :  { %v1586_v5 = vpack.c.bf16 %v1585_v3, %v1585_v3 }
0x1a42   :  { %2439 = vmatmul.mubr.msk.bf16.vlgmr.msra.gmra.mrb[24].mxu1 %vm213_vm2, %v1586_v5 }
0x1a43   :  { %1637 = vmatpush1.bf16.msra.mxu1 %v3441_v48  ;;  %1668 = vmatprep.mubr.bf16.mxu1 %v2966_v0 }
0x1a44   :  { %1836 = vmatprep.subr.bf16.mxu1 %v3382_v10 }
0x1a4e   :  { %2440 = vmatmul.mubr.msk.bf16.vlgmr.msra.gmra.mrb[24].mxu1 %vm268_vm0, %v1632_v12 }
0x1a4f   :  { %1837 = vmatpush1.bf16.msra.mxu1 %v3389_v13  ;;  %1868 = vmatprep.mubr.bf16.mxu1 %v2966_v0 }
0x1a50   :  { %1838 = vmatprep.subr.bf16.mxu1 %v3396_v16 }
0x1a53   :  { %1839 = vmatpush1.bf16.msra.mxu1 %v3402_v17 }
0x1a54   :  { %1840 = vmatprep.subr.bf16.mxu1 %v3408_v1 }
0x1a57   :  { %1841 = vmatpush1.bf16.msra.mxu1 %v3414_v18 }
0x1a58   :  { %1842 = vmatprep.subr.bf16.mxu1 %v3420_v19 }
0x1a5b   :  { %1843 = vmatpush1.bf16.msra.mxu1 %v3457_v50 }
0x1a5c   :  { %1882 = vmatprep.subr.bf16.mxu1 %v3427_v20 }
0x1b21   :  { %v1670_v35 = vpop.f32.mrb[24].mxu1 }
0x1b22   :  { %v1672_v21 = vpop.f32.mrb[25].mxu1  ;;  %v2503_v28 = vadd.f32 %v1670_v35, %v3151_v25 }
0x1b23   :  { %v2504_v22 = vadd.f32 %v1672_v21, %v3193_v36  ;;  %v1674_v23 = vpop.f32.mrb[26].mxu1 }
0x1b24   :  { %v1675_v24 = vpop.f32.mrb[27].mxu1  ;;  %v2441_v27 = vmul.f32 -1.442695, %v2503_v28 }
0x1b25   :  { %2739 = vtanh.f32 %v2504_v22  ;;  %v2442_v41 = vmul.f32 -1.442695, %v2504_v22 }
0x1b26   :  { %2741 = vpow2.f32 %v2441_v27 }
0x1b2f   :  { %v2740_v26 = vpop.eup %2739 }
0x1b30   :  { %1694 = vrot.lane.b32.xlu1 %v2740_v26, %s2968_s0  ;;  %v2742_v29 = vpop.eup %2741 }
0x1b31   :  { %v1685_v30 = vadd.f32 1.0, %v2742_v29 }
0x1b33   :  { %2743 = vrcp.f32 %v1685_v30 }
0x1b3d   :  { %v2744_v31 = vpop.eup %2743 }
0x1b3e   :  { %v1692_v37 = vmul.f32 %v2744_v31, %v1579_v58 }
0x1ba2   :  { %v1695_v32 = vpop.permute.xlu1 %1694 }
0x1ba3   :  { %v1697_v33 = vmul.f32 %v2744_v31, %v1695_v32 }
0x1ba5   :  { %1699 = vrot.lane.b32.xlu0 %v1697_v33, %s2968_s0 }
0x1ba9   :  { %1754 = vrot.lane.b32.xlu0 %v3356_v51, %s2968_s0 }
0x1c17   :  { %v1700_v38 = vpop.permute.xlu0 %1699 }
0x1c18   :  { %v1702_v39 = vadd.f32 %v1700_v38, %v1692_v37 }
0x1c1a   :  { %2745 = vtanh.f32 %v1702_v39 }
0x1c1b   :  { %2747 = vpow2.f32 %v2442_v41  ;;  %v1755_v49 = vpop.permute.xlu0 %1754 }
0x1c24   :  { %v2746_v40 = vpop.eup %2745 }
0x1c25   :  { %1705 = vrot.lane.b32.xlu1 %v2746_v40, %s2968_s0  ;;  %v2748_v42 = vpop.eup %2747 }
0x1c26   :  { %v1686_v43 = vadd.f32 1.0, %v2748_v42 }
0x1c28   :  { %2749 = vrcp.f32 %v1686_v43 }
0x1c32   :  { %v2750_v44 = vpop.eup %2749 }
0x1c97   :  { %v1706_v45 = vpop.permute.xlu1 %1705 }
0x1c98   :  { %v1708_v46 = vmul.f32 %v2750_v44, %v1706_v45 }
0x1c9a   :  { %v1709_v47 = vpack.c.bf16 %v1708_v46, %v1708_v46 }
0x1c9c   :  { %2443 = vmatmul.mubr.msk.bf16.vlgmr.msra.gmra.mrb[24].mxu0 %vm213_vm2, %v1709_v47 }
0x1c9d   :  { %1760 = vmatpush1.bf16.msra.mxu0 %v3441_v48  ;;  %1791 = vmatprep.mubr.bf16.mxu0 %v2966_v0 }
0x1c9e   :  { %1959 = vmatprep.subr.bf16.mxu0 %v3382_v10 }
0x1ca8   :  { %2444 = vmatmul.mubr.msk.bf16.vlgmr.msra.gmra.mrb[24].mxu0 %vm268_vm0, %v1755_v49 }
0x1ca9   :  { %1960 = vmatpush1.bf16.msra.mxu0 %v3389_v13  ;;  %1991 = vmatprep.mubr.bf16.mxu0 %v2966_v0 }
0x1caa   :  { %1961 = vmatprep.subr.bf16.mxu0 %v3396_v16 }
0x1cad   :  { %1962 = vmatpush1.bf16.msra.mxu0 %v3402_v17 }
0x1cae   :  { %1963 = vmatprep.subr.bf16.mxu0 %v3408_v1 }
0x1cb1   :  { %1964 = vmatpush1.bf16.msra.mxu0 %v3414_v18 }
0x1cb2   :  { %1965 = vmatprep.subr.bf16.mxu0 %v3420_v19 }
0x1cb5   :  { %1966 = vmatpush1.bf16.msra.mxu0 %v3457_v50 }
0x1cb6   :  { %2005 = vmatprep.subr.bf16.mxu0 %v3427_v20 }
0x1d7b   :  { %v1793_v4 = vpop.f32.mrb[24].mxu0 }
0x1d7c   :  { %v1795_v34 = vpop.f32.mrb[25].mxu0  ;;  %v2505_v8 = vadd.f32 %v1793_v4, %v3151_v25 }
0x1d7d   :  { %v2506_v6 = vadd.f32 %v1795_v34, %v3193_v36  ;;  %v1797_v52 = vpop.f32.mrb[26].mxu0 }
0x1d7e   :  { %v1798_v53 = vpop.f32.mrb[27].mxu0  ;;  %v2445_v9 = vmul.f32 -1.442695, %v2505_v8 }
0x1d7f   :  { %2751 = vtanh.f32 %v2506_v6  ;;  %v2446_v60 = vmul.f32 -1.442695, %v2506_v6 }
0x1d80   :  { %2753 = vpow2.f32 %v2445_v9 }
0x1d89   :  { %v2752_v7 = vpop.eup %2751 }
0x1d8a   :  { %1817 = vrot.lane.b32.xlu1 %v2752_v7, %s2968_s0  ;;  %v2754_v14 = vpop.eup %2753 }
0x1d8b   :  { %v1808_v15 = vadd.f32 1.0, %v2754_v14 }
0x1d8d   :  { %2755 = vrcp.f32 %v1808_v15 }
0x1d97   :  { %v2756_v54 = vpop.eup %2755 }
0x1d98   :  { %v1815_v56 = vmul.f32 %v2756_v54, %v1702_v39 }
0x1dfc   :  { %v1818_v55 = vpop.permute.xlu1 %1817 }
0x1dfd   :  { %v1820_v11 = vmul.f32 %v2756_v54, %v1818_v55 }
0x1dff   :  { %1822 = vrot.lane.b32.xlu0 %v1820_v11, %s2968_s0 }
0x1e03   :  { %1877 = vrot.lane.b32.xlu0 %v3356_v51, %s2972_s11 }
0x1e71   :  { %v1823_v57 = vpop.permute.xlu0 %1822 }
0x1e72   :  { %v1825_v58 = vadd.f32 %v1823_v57, %v1815_v56 }
0x1e74   :  { %2757 = vtanh.f32 %v1825_v58 }
0x1e75   :  { %2759 = vpow2.f32 %v2446_v60  ;;  %v1878_v12 = vpop.permute.xlu0 %1877 }
0x1e7e   :  { %v2758_v59 = vpop.eup %2757 }
0x1e7f   :  { %1828 = vrot.lane.b32.xlu1 %v2758_v59, %s2968_s0  ;;  %v2760_v61 = vpop.eup %2759 }
0x1e80   :  { %v1809_v62 = vadd.f32 1.0, %v2760_v61 }
0x1e82   :  { %2761 = vrcp.f32 %v1809_v62 }
0x1e8c   :  { %v2762_v63 = vpop.eup %2761 }
0x1ef1   :  { %v1829_v2 = vpop.permute.xlu1 %1828 }
0x1ef2   :  { %v1831_v3 = vmul.f32 %v2762_v63, %v1829_v2 }
0x1ef4   :  { %v1832_v5 = vpack.c.bf16 %v1831_v3, %v1831_v3 }
0x1ef6   :  { %2447 = vmatmul.mubr.msk.bf16.vlgmr.msra.gmra.mrb[28].mxu1 %vm213_vm2, %v1832_v5 }
0x1ef7   :  { %1883 = vmatpush1.bf16.msra.mxu1 %v3441_v48  ;;  %1914 = vmatprep.mubr.bf16.mxu1 %v2966_v0 }
0x1ef8   :  { %2082 = vmatprep.subr.bf16.mxu1 %v3382_v10 }
0x1f02   :  { %2448 = vmatmul.mubr.msk.bf16.vlgmr.msra.gmra.mrb[28].mxu1 %vm268_vm0, %v1878_v12 }
0x1f03   :  { %2083 = vmatpush1.bf16.msra.mxu1 %v3389_v13  ;;  %2114 = vmatprep.mubr.bf16.mxu1 %v2966_v0 }
0x1f04   :  { %2084 = vmatprep.subr.bf16.mxu1 %v3396_v16 }
0x1f07   :  { %2085 = vmatpush1.bf16.msra.mxu1 %v3402_v17 }
0x1f08   :  { %2086 = vmatprep.subr.bf16.mxu1 %v3408_v1 }
0x1f0b   :  { %2087 = vmatpush1.bf16.msra.mxu1 %v3414_v18 }
0x1f0c   :  { %2088 = vmatprep.subr.bf16.mxu1 %v3420_v19 }
0x1f0f   :  { %2089 = vmatpush1.bf16.msra.mxu1 %v3457_v50 }
0x1f10   :  { %2128 = vmatprep.subr.bf16.mxu1 %v3427_v20 }
0x1fd5   :  { %v1916_v35 = vpop.f32.mrb[28].mxu1 }
0x1fd6   :  { %v1918_v21 = vpop.f32.mrb[29].mxu1  ;;  %v2507_v28 = vadd.f32 %v1916_v35, %v3151_v25 }
0x1fd7   :  { %v2508_v22 = vadd.f32 %v1918_v21, %v3193_v36  ;;  %v1920_v23 = vpop.f32.mrb[30].mxu1 }
0x1fd8   :  { %v1921_v24 = vpop.f32.mrb[31].mxu1  ;;  %v2449_v27 = vmul.f32 -1.442695, %v2507_v28 }
0x1fd9   :  { %2763 = vtanh.f32 %v2508_v22  ;;  %v2450_v40 = vmul.f32 -1.442695, %v2508_v22 }
0x1fda   :  { %2765 = vpow2.f32 %v2449_v27 }
0x1fe3   :  { %v2764_v26 = vpop.eup %2763 }
0x1fe4   :  { %1940 = vrot.lane.b32.xlu1 %v2764_v26, %s2968_s0  ;;  %v2766_v29 = vpop.eup %2765 }
0x1fe5   :  { %v1931_v30 = vadd.f32 1.0, %v2766_v29 }
0x1fe7   :  { %2767 = vrcp.f32 %v1931_v30 }
0x1ff1   :  { %v2768_v31 = vpop.eup %2767 }
0x1ff2   :  { %v1938_v33 = vmul.f32 %v2768_v31, %v1825_v58 }
0x2056   :  { %v1941_v32 = vpop.permute.xlu1 %1940 }
0x2057   :  { %v1943_v20 = vmul.f32 %v2768_v31, %v1941_v32 }
0x2059   :  { %1945 = vrot.lane.b32.xlu0 %v1943_v20, %s2968_s0 }
0x205d   :  { %2000 = vrot.lane.b32.xlu0 %v3356_v51, %s2973_s9 }
0x20cb   :  { %v1946_v37 = vpop.permute.xlu0 %1945 }
0x20cc   :  { %v1948_v38 = vadd.f32 %v1946_v37, %v1938_v33 }
0x20ce   :  { %2769 = vtanh.f32 %v1948_v38 }
0x20cf   :  { %2771 = vpow2.f32 %v2450_v40  ;;  %v2001_v47 = vpop.permute.xlu0 %2000 }
0x20d8   :  { %v2770_v39 = vpop.eup %2769 }
0x20d9   :  { %1951 = vrot.lane.b32.xlu1 %v2770_v39, %s2968_s0  ;;  %v2772_v41 = vpop.eup %2771 }
0x20da   :  { %v1932_v42 = vadd.f32 1.0, %v2772_v41 }
0x20dc   :  { %2773 = vrcp.f32 %v1932_v42 }
0x20e6   :  { %v2774_v43 = vpop.eup %2773 }
0x214b   :  { %v1952_v44 = vpop.permute.xlu1 %1951 }
0x214c   :  { %v1954_v45 = vmul.f32 %v2774_v43, %v1952_v44 }
0x214e   :  { %v1955_v46 = vpack.c.bf16 %v1954_v45, %v1954_v45 }
0x2150   :  { %2451 = vmatmul.mubr.msk.bf16.vlgmr.msra.gmra.mrb[28].mxu0 %vm213_vm2, %v1955_v46 }
0x2151   :  { %2006 = vmatpush1.bf16.msra.mxu0 %v3441_v48  ;;  %2037 = vmatprep.mubr.bf16.mxu0 %v2966_v0 }
0x2152   :  { %2205 = vmatprep.subr.bf16.mxu0 %v3382_v10 }
0x215c   :  { %2452 = vmatmul.mubr.msk.bf16.vlgmr.msra.gmra.mrb[28].mxu0 %vm268_vm0, %v2001_v47 }
0x215d   :  { %2206 = vmatpush1.bf16.msra.mxu0 %v3389_v13  ;;  %2237 = vmatprep.mubr.bf16.mxu0 %v2966_v0 }
0x215e   :  { %2207 = vmatprep.subr.bf16.mxu0 %v3396_v16 }
0x2161   :  { %2208 = vmatpush1.bf16.msra.mxu0 %v3402_v17 }
0x2162   :  { %2209 = vmatprep.subr.bf16.mxu0 %v3408_v1 }
0x2165   :  { %2210 = vmatpush1.bf16.msra.mxu0 %v3414_v18 }
0x2166   :  { %2211 = vmatprep.subr.bf16.mxu0 %v3420_v19 }
0x2169   :  { %2212 = vmatpush1.bf16.msra.mxu0 %v3457_v50 }
0x222f   :  { %v2039_v10 = vpop.f32.mrb[28].mxu0 }
0x2230   :  { %v2041_v49 = vpop.f32.mrb[29].mxu0  ;;  %v2509_v16 = vadd.f32 %v2039_v10, %v3151_v25  ;;  %v2462_v10 = vld [vmem:[#allocation7] ss:$0 sm:$0xff] }
0x2231   :  { %v2510_v4 = vadd.f32 %v2041_v49, %v3193_v36  ;;  %v2043_v34 = vpop.f32.mrb[30].mxu0 }
0x2232   :  { %v2044_v13 = vpop.f32.mrb[31].mxu0  ;;  %v2453_v17 = vmul.f32 -1.442695, %v2509_v16  ;;  %v2975_v34 = vmov 0.0   ;;  %v2463_v16 = vld [vmem:[#allocation8] ss:$0 sm:$0xff] }
0x2233   :  { %2775 = vtanh.f32 %v2510_v4  ;;  %v2454_v14 = vmul.f32 -1.442695, %v2510_v4  ;;  %v2606_v13 = vld [vmem:[%s3595_s8 + $0x8] sm:$0xff]  }
0x2234   :  { %2777 = vpow2.f32 %v2453_v17 }
0x223d   :  { %v2776_v6 = vpop.eup %2775 }
0x223e   :  { %2063 = vrot.lane.b32.xlu1 %v2776_v6, %s2968_s0  ;;  %v2778_v1 = vpop.eup %2777 }
0x223f   :  { %v2054_v18 = vadd.f32 1.0, %v2778_v1 }
0x2241   :  { %2779 = vrcp.f32 %v2054_v18 }
0x224b   :  { %v2780_v19 = vpop.eup %2779 }
0x224c   :  { %v2061_v53 = vmul.f32 %v2780_v19, %v1948_v38 }
0x22b0   :  { %v2064_v52 = vpop.permute.xlu1 %2063 }
0x22b1   :  { %v2066_v50 = vmul.f32 %v2780_v19, %v2064_v52 }
0x22b3   :  { %2068 = vrot.lane.b32.xlu0 %v2066_v50, %s2968_s0 }
0x22b7   :  { %2123 = vrot.lane.b32.xlu0 %v3356_v51, %s2974_s12 }
0x2325   :  { %v2069_v7 = vpop.permute.xlu0 %2068 }
0x2326   :  { %v2071_v8 = vadd.f32 %v2069_v7, %v2061_v53 }
0x2328   :  { %2781 = vtanh.f32 %v2071_v8 }
0x2329   :  { %2783 = vpow2.f32 %v2454_v14  ;;  %v2124_v51 = vpop.permute.xlu0 %2123 }
0x2332   :  { %v2782_v9 = vpop.eup %2781 }
0x2333   :  { %2074 = vrot.lane.b32.xlu1 %v2782_v9, %s2968_s0  ;;  %v2784_v15 = vpop.eup %2783 }
0x2334   :  { %v2055_v54 = vadd.f32 1.0, %v2784_v15 }
0x2336   :  { %2785 = vrcp.f32 %v2055_v54  ;;  %v2464_v54 = vld [vmem:[#allocation10] ss:$0 sm:$0xff] }
0x2340   :  { %v2786_v55 = vpop.eup %2785 }
0x23a5   :  { %v2075_v11 = vpop.permute.xlu1 %2074 }
0x23a6   :  { %v2077_v56 = vmul.f32 %v2786_v55, %v2075_v11 }
0x23a8   :  { %v2078_v57 = vpack.c.bf16 %v2077_v56, %v2077_v56 }
0x23aa   :  { %2455 = vmatmul.mubr.msk.bf16.vlgmr.msra.gmra.mrb[32].mxu1 %vm213_vm2, %v2078_v57 }
0x23ab   :  { %2129 = vmatpush1.bf16.msra.mxu1 %v3441_v48  ;;  %2160 = vmatprep.mubr.bf16.mxu1 %v2966_v0 }
0x23ac   :  { %2471 = vmatprep.subr.bf16.mxu1 %v2975_v34 }
0x23b6   :  { %2456 = vmatmul.mubr.msk.bf16.vlgmr.msra.gmra.mrb[32].mxu1 %vm268_vm0, %v2124_v51 }
0x23b7   :  { %2475 = vmatprep.mubr.msk.bf16.mxu1 %vm2976_vm3, %v2975_v34 }
0x2489   :  { %v2162_v58 = vpop.f32.mrb[32].mxu1 }
0x248a   :  { %v2164_v59 = vpop.f32.mrb[33].mxu1  ;;  %v2511_v2 = vadd.f32 %v2162_v58, %v3151_v25 }
0x248b   :  { %v2512_v60 = vadd.f32 %v2164_v59, %v3193_v36  ;;  %v2166_v61 = vpop.f32.mrb[34].mxu1 }
0x248c   :  { %v2167_v62 = vpop.f32.mrb[35].mxu1  ;;  %v2457_v3 = vmul.f32 -1.442695, %v2511_v2 }
0x248d   :  { %2787 = vtanh.f32 %v2512_v60  ;;  %v2458_v26 = vmul.f32 -1.442695, %v2512_v60 }
0x248e   :  { %2789 = vpow2.f32 %v2457_v3 }
0x2497   :  { %v2788_v63 = vpop.eup %2787 }
0x2498   :  { %2186 = vrot.lane.b32.xlu1 %v2788_v63, %s2968_s0  ;;  %v2790_v48 = vpop.eup %2789 }
0x2499   :  { %v2177_v5 = vadd.f32 1.0, %v2790_v48 }
0x249b   :  { %2791 = vrcp.f32 %v2177_v5 }
0x24a5   :  { %v2792_v0 = vpop.eup %2791 }
0x24a6   :  { %v2184_v21 = vmul.f32 %v2792_v0, %v2071_v8 }
0x250a   :  { %v2187_v12 = vpop.permute.xlu1 %2186 }
0x250b   :  { %v2189_v35 = vmul.f32 %v2792_v0, %v2187_v12 }
0x250d   :  { %2191 = vrot.lane.b32.xlu0 %v2189_v35, %s2968_s0 }
0x257f   :  { %v2192_v22 = vpop.permute.xlu0 %2191 }
0x2580   :  { %v2194_v23 = vadd.f32 %v2192_v22, %v2184_v21 }
0x2582   :  { %2793 = vtanh.f32 %v2194_v23 }
0x2583   :  { %2795 = vpow2.f32 %v2458_v26 }
0x258c   :  { %v2794_v24 = vpop.eup %2793 }
0x258d   :  { %2197 = vrot.lane.b32.xlu1 %v2794_v24, %s2968_s0  ;;  %v2796_v28 = vpop.eup %2795 }
0x258e   :  { %v2178_v27 = vadd.f32 1.0, %v2796_v28 }
0x2590   :  { %2797 = vrcp.f32 %v2178_v27 }
0x259a   :  { %v2798_v29 = vpop.eup %2797 }
0x25ff   :  { %v2198_v30 = vpop.permute.xlu1 %2197 }
0x2600   :  { %v2200_v31 = vmul.f32 %v2798_v29, %v2198_v30 }
0x2602   :  { %v2201_v32 = vpack.c.bf16 %v2200_v31, %v2200_v31 }
0x2604   :  { %2459 = vmatmul.mubr.msk.bf16.vlgmr.msra.gmra.mrb[32].mxu0 %vm213_vm2, %v2201_v32 }
0x26d7   :  { %v2239_v20 = vpop.f32.mrb[32].mxu0 }
0x26d8   :  { %v2241_v33 = vpop.f32.mrb[33].mxu0  ;;  %v2240_v41 = vadd.f32 %v2239_v20, %v3151_v25  ;;  %v2605_v25 = vld [vmem:[%s3595_s8] sm:$0xff]   ;;  %s2977_s8 = smov [#allocation11]  }
0x26d9   :  { %v2242_v37 = vadd.f32 %v2241_v33, %v3193_v36  ;;  %v2243_v38 = vpop.f32.mrb[34].mxu0  ;;  %2472 = vmatpush3.bf16.msra.mxu1 %v2605_v25 }
0x26da   :  { %v2244_v39 = vpop.f32.mrb[35].mxu0  ;;  %v2460_v42 = vmul.f32 -1.442695, %v2240_v41  ;;  %2473 = vmatprep.subr.bf16.mxu1 %v2975_v34 }
0x26db   :  { %2799 = vtanh.f32 %v2242_v37  ;;  %v2461_v17 = vmul.f32 -1.442695, %v2242_v37 }
0x26dc   :  { %2801 = vpow2.f32 %v2460_v42 }
0x26dd   :  { %2474 = vmatpush3.bf16.msra.mxu1 %v2606_v13 }
0x26e5   :  { %v2800_v40 = vpop.eup %2799 }
0x26e6   :  { %2261 = vrot.lane.b32.xlu0 %v2800_v40, %s2968_s0  ;;  %v2802_v43 = vpop.eup %2801 }
0x26e7   :  { %v2252_v44 = vadd.f32 1.0, %v2802_v43 }
0x26e9   :  { %2803 = vrcp.f32 %v2252_v44 }
0x26f3   :  { %v2804_v45 = vpop.eup %2803 }
0x26f4   :  { %v2259_v36 = vmul.f32 %v2804_v45, %v2194_v23 }
0x2758   :  { %v2262_v46 = vpop.permute.xlu0 %2261 }
0x2759   :  { %v2264_v47 = vmul.f32 %v2804_v45, %v2262_v46 }
0x275b   :  { %2266 = vrot.lane.b32.xlu1 %v2264_v47, %s2968_s0 }
0x275f   :  { %2282 = vrot.lane.b32.xlu1 %v2462_v10, %s2973_s9 }
0x27cd   :  { %v2267_v49 = vpop.permute.xlu1 %2266 }
0x27ce   :  { %v2269_v4 = vadd.f32 %v2267_v49, %v2259_v36 }
0x27d0   :  { %2805 = vtanh.f32 %v2269_v4 }
0x27d1   :  { %2807 = vpow2.f32 %v2461_v17  ;;  %v2283_v50 = vpop.permute.xlu1 %2282 }
0x27da   :  { %v2806_v6 = vpop.eup %2805 }
0x27db   :  { %2272 = vrot.lane.b32.xlu0 %v2806_v6, %s2968_s0  ;;  %v2808_v1 = vpop.eup %2807  ;;  %s2375_s0 = sshll.u32 %s2977_s8, 4  ;;  %s2376_s0 = int_to_ptr.vmem [resolvable:$true] %s2375_s0 }
0x27dc   :  { %v2253_v18 = vadd.f32 1.0, %v2808_v1  ;;  %s2931_s11 = scalar_lea.vmem %s2376_s0, 32  ;;  %p2936_p13 = scmp.lt.s32.totalorder %s2376_s0, %s2376_s0 }
0x27dd   :  { %p2932_p12 = scmp.ne.s32.totalorder %s2376_s0, %s2931_s11  ;;  %p2937_p0 = scmp.lt.s32.totalorder %s2931_s11, %s2931_s11 }
0x27de   :  { %2809 = vrcp.f32 %v2253_v18 }
0x27df   :  { %2292 = vrot.lane.b32.xlu0 %v2463_v16, %s2973_s9  ;;  %p2938_p1 = por %p2937_p0, %p2936_p13 }
0x27e1   :  { %p2939_p2 = pnand %p2938_p1, %p2932_p12 }
0x27e8   :  { %v2810_v19 = vpop.eup %2809 }
0x284d   :  { %v2273_v52 = vpop.permute.xlu0 %2272 }
0x284e   :  { %v2275_v53 = vmul.f32 %v2810_v19, %v2273_v52 }
0x2850   :  { %v2285_v7 = vmul.f32 %v2283_v50, %v2275_v53 }
0x2851   :  { %v2293_v8 = vpop.permute.xlu0 %2292 }
0x2852   :  { %v2295_v9 = vadd.f32 %v2293_v8, %v2285_v7 }
0x2854   :  { %v2296_v14 = vpack.c.bf16 %v2295_v9, %v2295_v9 }
0x2856   :  { %2309 = vrot.lane.b32.xlu1 %v2296_v14, %s2970_s29 }
0x28c8   :  { %v2310_v15 = vpop.permute.xlu1 %2309 }
0x28c9   :  { %2476 = vmatmul.mubr.msk.bf16.vlgmr.msra.gmra.mrb[36].mxu1 %vm2323_vm4, %v2310_v15 }
0x299c   :  { %v2361_v55 = vpop.f32.mrb[36].mxu1 }
0x299d   :  { %v2362_v11 = vadd.f32 %v2464_v54, %v2361_v55  ;;  %v2477_v56 = vpop.f32.mrb[37].mxu1 }
0x299e   :  { %v2364_v57 = vpop.f32.mrb[38].mxu1 }
0x299f   :  { %v2478_v51 = vpop.f32.mrb[39].mxu1  ;;  %2368 = vst.msk [vmem:[#allocation11] sm:$0x3] %vm2367_vm5, %v2362_v11 }
0x29a0   :  { %2942 = shalt.err (!%p2939_p2)
}
0x29a1   :  { %s2943_s12 = scalar_lea.hbm %s3597_s10, 32 }
0x29a2   :  { %p2944_p3 = scmp.ne.s32.totalorder %s3597_s10, %s2943_s12  ;;  %p2947_p4 = scmp.lt.u32.totalorder %s2943_s12, %s3597_s10 }
0x29a4   :  { %p2949_p5 = pnand %p2947_p4, %p2944_p3 }
0x29a6   :  { %2952 = shalt.err (!%p2949_p5)
}
0x29a7   :  { %2378 = dma.vmem_to_hbm [thread:$0]  %s2376_s0, 32, %s3597_s10, [#allocation4]  }
0x29a8   :  { %2959 = dma.done.wait [#allocation4], 32  }
0x29a9   :  { %2960 = vsyncadd [#allocation4], 4294967264 }
0x29aa   :  { %2382 = vsyncpa [#allocation3], 1 }
0x29ab   :  { %2383 = vsyncpa [#allocation6], 1 }
0x29ac   :  { %2384 = vsyncpa [#allocation9], 1 }
0x29ad   :  { %2385 = vsyncpa [#allocation4], 1 }

</bundles_post_ra>
